<compile_context>
chip_gen: v7x
topology: tpu7x:2x2x1
jax: 0.10.0
libtpu: 0.0.40
codegen_flags: <defaults>
</compile_context>

<pallas_src>
import jax
import jax.numpy as jnp
from jax.experimental import pallas as pl
from jax.experimental.pallas import tpu as pltpu


def d_forward_kernel(x_ref, h0_ref, wih_ref, whh_ref, bih_ref, bhn_ref,
                     w1_hbm_ref, b1_ref, w2t_ref, b2_ref,
                     out_ref, w1_vmem, w1_sem):
    """Single-program kernel.

    x_ref    : (S*BP, I)    time-major flattened input (row t*BP + b == x[b, t, :])
    h0_ref   : (BP, 128)    initial hidden state, lanes [H:128) zero
    wih_ref  : (I, 384)     input->gate weights, gate g in lanes [128g, 128g+H)
    whh_ref  : (128, 384)   hidden->gate weights, same gate layout, rows [H:128) zero
    bih_ref  : (1, 384)     input biases with bhh_r / bhh_z folded in
    bhn_ref  : (1, 128)     hidden n-gate bias (stays inside r * (...) per PyTorch)
    w1_hbm_ref:(S*H, 640)   bf16 first Linear weight (transposed, lane-padded), HBM
    b1_ref   : (1, 640)     first Linear bias, zero-padded (padding MUST be 0)
    w2t_ref  : (1, 640)     second Linear weight row, padded lanes MUST be 0
    b2_ref   : (1, 1)
    out_ref  : (BP, 1)
    w1_vmem  : (S*H, 640)   bf16 VMEM scratch, destination of the async copy
    w1_sem   : DMA semaphore
    """
    # Start the w1 HBM->VMEM copy immediately; it overlaps the GRU recurrence.
    w1_copy = pltpu.make_async_copy(w1_hbm_ref, w1_vmem, w1_sem)
    w1_copy.start()

    BP = h0_ref.shape[0]
    S = x_ref.shape[0] // BP
    GP = whh_ref.shape[1] // 3            # 128-lane stride per gate
    H = w1_vmem.shape[0] // S             # true hidden size (32)

    # Hoisted input projection for ALL timesteps (biases already folded in).
    gx_all = jnp.dot(x_ref[...], wih_ref[...],
                     preferred_element_type=jnp.float32) + bih_ref[...]

    whh = whh_ref[...]
    # Hoisted, loop-invariant broadcast of the n-gate hidden bias.
    bhn = jnp.broadcast_to(bhn_ref[...], (BP, GP))

    h = h0_ref[...]                       # (BP, 128), lives in registers
    hs = []
    for t in range(S):                    # static unroll (S known at trace time)
        gx = gx_all[t * BP:(t + 1) * BP, :]                 # (BP, 384), tile-aligned
        gh = jnp.dot(h, whh, preferred_element_type=jnp.float32)   # (BP, 384)
        r = jax.nn.sigmoid(gx[:, 0:GP] + gh[:, 0:GP])
        z = jax.nn.sigmoid(gx[:, GP:2 * GP] + gh[:, GP:2 * GP])
        n = jnp.tanh(gx[:, 2 * GP:3 * GP] + r * (gh[:, 2 * GP:3 * GP] + bhn))
        h = (1.0 - z) * n + z * h                           # PyTorch GRU update
        hs.append(h)

    # Matches x.reshape(B, -1): per batch row, [h_0 | h_1 | ... | h_{S-1}].
    # Lane slicing happens AFTER the serial loop (off the critical path).
    feats = jnp.concatenate([ht[:, :H] for ht in hs], axis=1)   # (BP, S*H)

    w1_copy.wait()                                          # w1 now in VMEM
    hid = jax.nn.sigmoid(
        jnp.dot(feats.astype(jnp.bfloat16), w1_vmem[...],
                preferred_element_type=jnp.float32) + b1_ref[...])   # (BP, 640)
    # TODO(synk): nn.Dropout() is identity in eval mode; training-mode dropout not modeled.
    logit = jnp.sum(hid * w2t_ref[...], axis=-1, keepdims=True) + b2_ref[...]
    out_ref[...] = jax.nn.sigmoid(logit)                    # (BP, 1)


def _pad_lanes(a, axis, new_size):
    pad = [(0, 0)] * a.ndim
    pad[axis] = (0, new_size - a.shape[axis])
    return jnp.pad(a, pad)


def d_forward(x, state, params):
    """x: (B, S, I) float32, state: (B, 1, H) float32  ->  (B, 1) float32."""
    B, S, I = x.shape
    H = params["whh"].shape[-1]
    N1 = params["w1"].shape[-1]                      # 516
    NP = ((N1 + 127) // 128) * 128                   # 640 (lane-dense)
    GP = 128                                         # per-gate lane stride
    HP = 128                                         # carried hidden lane width
    BP = max(8, ((B + 7) // 8) * 8)                  # batch padded to 8 sublanes
    assert H <= GP and params["w1"].shape[0] == S * H

    # Batch-pad, go time-major, flatten so one matmul covers all timesteps.
    x_p = jnp.zeros((BP, S, I), jnp.float32).at[:B].set(x)
    x_flat = jnp.transpose(x_p, (1, 0, 2)).reshape(S * BP, I)
    h0 = jnp.zeros((BP, HP), jnp.float32).at[:B, :H].set(state[:, 0, :])

    # Gate g occupies lanes [g*128, g*128 + H); padding lanes are zero.
    def gate_pad_cols(w3):                           # (3, R, H) -> (R, 3*128)
        out = jnp.zeros((w3.shape[1], 3 * GP), jnp.float32)
        for g in range(3):
            out = out.at[:, g * GP:g * GP + H].set(w3[g])
        return out

    wih_cat = gate_pad_cols(params["wih"])                              # (I, 384)
    whh_cat = jnp.zeros((HP, 3 * GP), jnp.float32).at[:H].set(
        gate_pad_cols(params["whh"]))                                   # (128, 384)

    # Fold bhh_r / bhh_z into the hoisted input bias; keep bhh_n separate
    # (it must sit inside r * (h@Whn + bhn) to match PyTorch).
    bih_fold = jnp.stack([params["bih"][0] + params["bhh"][0],
                          params["bih"][1] + params["bhh"][1],
                          params["bih"][2]], axis=0)                    # (3, 1, H)
    bih_cat = gate_pad_cols(bih_fold)                                   # (1, 384)
    bhn = jnp.zeros((1, GP), jnp.float32).at[:, :H].set(params["bhh"][2])

    # Classifier, lane-padded 516 -> 640. Padded b1 columns give hid=0.5 there,
    # which is exact only because the padded w2 lanes below are zero.
    w1_pad = _pad_lanes(params["w1"], 1, NP).astype(jnp.bfloat16)       # (S*H, NP)
    b1_pad = _pad_lanes(params["b1"], 1, NP)                            # (1, NP)
    w2t_pad = _pad_lanes(params["w2"].T, 1, NP)                         # (1, NP), pad lanes zero

    inputs = (x_flat, h0, wih_cat, whh_cat, bih_cat, bhn,
              w1_pad, b1_pad, w2t_pad, params["b2"])

    vmem = pl.BlockSpec(memory_space=pltpu.MemorySpace.VMEM)
    out = pl.pallas_call(
        d_forward_kernel,
        out_shape=jax.ShapeDtypeStruct((BP, 1), jnp.float32),
        in_specs=[vmem] * 6
                 + [pl.BlockSpec(memory_space=pl.ANY)]   # w1 stays in HBM, manual DMA
                 + [vmem] * 3,
        out_specs=vmem,
        scratch_shapes=[pltpu.VMEM((S * H, NP), jnp.bfloat16),
                        pltpu.SemaphoreType.DMA(())],
    )(*inputs)
    return out[:B]


def init_params(key, input_size, seq_len_ctor, gru_units):
    """Deterministic synthetic parameters (PyTorch-style uniform init)."""
    H, I = gru_units, input_size
    F1 = seq_len_ctor * gru_units * 2          # == S * H with S = 2*seq_len_ctor
    ks = jax.random.split(key, 8)
    sg = 1.0 / jnp.sqrt(H)

    wih = jax.random.uniform(ks[0], (3, I, H), jnp.float32, -sg, sg)
    whh = jax.random.uniform(ks[1], (3, H, H), jnp.float32, -sg, sg)
    bih = jax.random.uniform(ks[2], (3, 1, H), jnp.float32, -sg, sg)
    bhh = jax.random.uniform(ks[3], (3, 1, H), jnp.float32, -sg, sg)

    s1 = 1.0 / jnp.sqrt(F1)
    w1 = jax.random.uniform(ks[4], (F1, 516), jnp.float32, -s1, s1)
    b1 = jax.random.uniform(ks[5], (1, 516), jnp.float32, -s1, s1)

    s2 = 1.0 / jnp.sqrt(516.0)
    w2 = jax.random.uniform(ks[6], (516, 1), jnp.float32, -s2, s2)
    b2 = jax.random.uniform(ks[7], (1, 1), jnp.float32, -s2, s2)

    return dict(wih=wih, whh=whh, bih=bih, bhh=bhh, w1=w1, b1=b1, w2=w2, b2=b2)


def d_forward_reference(x, state, params):
    """Pure-JAX reference reproducing the PyTorch forward (eval mode)."""
    B, S, I = x.shape
    H = params["whh"].shape[-1]
    h = state[:, 0, :]
    hs = []
    for t in range(S):
        x_t = x[:, t, :]
        r = jax.nn.sigmoid(x_t @ params["wih"][0] + params["bih"][0]
                           + h @ params["whh"][0] + params["bhh"][0])
        z = jax.nn.sigmoid(x_t @ params["wih"][1] + params["bih"][1]
                           + h @ params["whh"][1] + params["bhh"][1])
        n = jnp.tanh(x_t @ params["wih"][2] + params["bih"][2]
                     + r * (h @ params["whh"][2] + params["bhh"][2]))
        h = (1.0 - z) * n + z * h
        hs.append(h)
    feats = jnp.stack(hs, axis=1).reshape(B, S * H)            # x.reshape(B, -1)
    hid = jax.nn.sigmoid(feats @ params["w1"] + params["b1"])
    return jax.nn.sigmoid(hid @ params["w2"] + params["b2"])


if __name__ == "__main__":
    # Module hyperparameters (small): input_size=16, seq_len(ctor)=4, gru_units=32
    input_size, seq_len_ctor, gru_units = 16, 4, 32
    B, S = 2, 2 * seq_len_ctor                                  # actual seq len = 8

    key = jax.random.PRNGKey(0)
    k_x, k_s, k_p = jax.random.split(key, 3)
    x = jax.random.normal(k_x, (B, S, input_size), jnp.float32)
    state = jax.random.normal(k_s, (B, 1, gru_units), jnp.float32)
    params = init_params(k_p, input_size, seq_len_ctor, gru_units)

    out = jax.block_until_ready(d_forward(x, state, params))
    ref = jax.block_until_ready(d_forward_reference(x, state, params))

    assert out.shape == (B, 1), out.shape
    assert jnp.allclose(out, ref, atol=1e-2, rtol=1e-2), (out, ref)
    print("KERNEL_OK")
</pallas_src>

<mosaic_0001>
module attributes {stable_mosaic.version = 11 : i64} {
  func.func @d_forward_kernel(%arg0: memref<64x16xf32, #tpu.memory_space<vmem>>, %arg1: memref<8x128xf32, #tpu.memory_space<vmem>>, %arg2: memref<16x384xf32, #tpu.memory_space<vmem>>, %arg3: memref<128x384xf32, #tpu.memory_space<vmem>>, %arg4: memref<1x384xf32, #tpu.memory_space<vmem>>, %arg5: memref<1x128xf32, #tpu.memory_space<vmem>>, %arg6: memref<256x640xbf16, #tpu.memory_space<any>>, %arg7: memref<1x640xf32, #tpu.memory_space<vmem>>, %arg8: memref<1x640xf32, #tpu.memory_space<vmem>>, %arg9: memref<1x1xf32, #tpu.memory_space<vmem>>, %arg10: memref<8x1xf32, #tpu.memory_space<vmem>>, %arg11: memref<256x640xbf16, #tpu.memory_space<vmem>>, %arg12: memref<!tpu.dma_semaphore, #tpu.memory_space<semaphore_mem>>) attributes {dimension_semantics = [], scalar_prefetch = 0 : i64, scratch_operands = 2 : i64, tpu.core_type = #tpu.core_type<tc>} {
    tpu.enqueue_dma source(%arg6 : memref<256x640xbf16, #tpu.memory_space<any>>) target(%arg11 : memref<256x640xbf16, #tpu.memory_space<vmem>>) target_semaphore(%arg12 : memref<!tpu.dma_semaphore, #tpu.memory_space<semaphore_mem>>)
    %c0 = arith.constant 0 : index
    %c0_0 = arith.constant 0 : index
    %0 = vector.load %arg0[%c0, %c0_0] : memref<64x16xf32, #tpu.memory_space<vmem>>, vector<64x16xf32>
    %c0_1 = arith.constant 0 : index
    %c0_2 = arith.constant 0 : index
    %1 = vector.load %arg2[%c0_1, %c0_2] : memref<16x384xf32, #tpu.memory_space<vmem>>, vector<16x384xf32>
    %cst = arith.constant dense<0.000000e+00> : vector<64x384xf32>
    %2 = tpu.matmul %0, %1, %cst {dimension_numbers = #tpu.dot_dimension_numbers<[1], [0], [0], [1], [0, 0, 1, 1], [], []>} : vector<64x16xf32>, vector<16x384xf32>, vector<64x384xf32> -> vector<64x384xf32>
    %c0_3 = arith.constant 0 : index
    %c0_4 = arith.constant 0 : index
    %3 = vector.load %arg4[%c0_3, %c0_4] : memref<1x384xf32, #tpu.memory_space<vmem>>, vector<1x384xf32>
    %4 = vector.broadcast %3 : vector<1x384xf32> to vector<64x384xf32>
    %5 = arith.addf %2, %4 : vector<64x384xf32>
    %c0_5 = arith.constant 0 : index
    %c0_6 = arith.constant 0 : index
    %6 = vector.load %arg3[%c0_5, %c0_6] : memref<128x384xf32, #tpu.memory_space<vmem>>, vector<128x384xf32>
    %c0_7 = arith.constant 0 : index
    %c0_8 = arith.constant 0 : index
    %7 = vector.load %arg5[%c0_7, %c0_8] : memref<1x128xf32, #tpu.memory_space<vmem>>, vector<1x128xf32>
    %8 = vector.shape_cast %7 : vector<1x128xf32> to vector<1x128xf32>
    %9 = vector.broadcast %8 : vector<1x128xf32> to vector<8x128xf32>
    %c0_9 = arith.constant 0 : index
    %c0_10 = arith.constant 0 : index
    %10 = vector.load %arg1[%c0_9, %c0_10] : memref<8x128xf32, #tpu.memory_space<vmem>>, vector<8x128xf32>
    %11 = vector.extract_strided_slice %5 {offsets = [0, 0], sizes = [8, 384], strides = [1, 1]} : vector<64x384xf32> to vector<8x384xf32>
    %cst_11 = arith.constant dense<0.000000e+00> : vector<8x384xf32>
    %12 = tpu.matmul %10, %6, %cst_11 {dimension_numbers = #tpu.dot_dimension_numbers<[1], [0], [0], [1], [0, 0, 1, 1], [], []>} : vector<8x128xf32>, vector<128x384xf32>, vector<8x384xf32> -> vector<8x384xf32>
    %13 = vector.extract_strided_slice %11 {offsets = [0, 0], sizes = [8, 128], strides = [1, 1]} : vector<8x384xf32> to vector<8x128xf32>
    %14 = vector.extract_strided_slice %12 {offsets = [0, 0], sizes = [8, 128], strides = [1, 1]} : vector<8x384xf32> to vector<8x128xf32>
    %15 = arith.addf %13, %14 : vector<8x128xf32>
    %16 = arith.negf %15 : vector<8x128xf32>
    %17 = math.exp %16 : vector<8x128xf32>
    %cst_12 = arith.constant 1.000000e+00 : f32
    %18 = vector.broadcast %cst_12 : f32 to vector<8x128xf32>
    %19 = arith.addf %18, %17 : vector<8x128xf32>
    %20 = arith.divf %18, %19 : vector<8x128xf32>
    %21 = vector.extract_strided_slice %11 {offsets = [0, 128], sizes = [8, 128], strides = [1, 1]} : vector<8x384xf32> to vector<8x128xf32>
    %22 = vector.extract_strided_slice %12 {offsets = [0, 128], sizes = [8, 128], strides = [1, 1]} : vector<8x384xf32> to vector<8x128xf32>
    %23 = arith.addf %21, %22 : vector<8x128xf32>
    %24 = arith.negf %23 : vector<8x128xf32>
    %25 = math.exp %24 : vector<8x128xf32>
    %cst_13 = arith.constant 1.000000e+00 : f32
    %26 = vector.broadcast %cst_13 : f32 to vector<8x128xf32>
    %27 = arith.addf %26, %25 : vector<8x128xf32>
    %28 = arith.divf %26, %27 : vector<8x128xf32>
    %29 = vector.extract_strided_slice %11 {offsets = [0, 256], sizes = [8, 128], strides = [1, 1]} : vector<8x384xf32> to vector<8x128xf32>
    %30 = vector.extract_strided_slice %12 {offsets = [0, 256], sizes = [8, 128], strides = [1, 1]} : vector<8x384xf32> to vector<8x128xf32>
    %31 = arith.addf %30, %9 : vector<8x128xf32>
    %32 = arith.mulf %20, %31 : vector<8x128xf32>
    %33 = arith.addf %29, %32 : vector<8x128xf32>
    %34 = math.tanh %33 : vector<8x128xf32>
    %cst_14 = arith.constant 1.000000e+00 : f32
    %35 = vector.broadcast %cst_14 : f32 to vector<8x128xf32>
    %36 = arith.subf %35, %28 : vector<8x128xf32>
    %37 = arith.mulf %36, %34 : vector<8x128xf32>
    %38 = arith.mulf %28, %10 : vector<8x128xf32>
    %39 = arith.addf %37, %38 : vector<8x128xf32>
    %40 = vector.extract_strided_slice %5 {offsets = [8, 0], sizes = [8, 384], strides = [1, 1]} : vector<64x384xf32> to vector<8x384xf32>
    %cst_15 = arith.constant dense<0.000000e+00> : vector<8x384xf32>
    %41 = tpu.matmul %39, %6, %cst_15 {dimension_numbers = #tpu.dot_dimension_numbers<[1], [0], [0], [1], [0, 0, 1, 1], [], []>} : vector<8x128xf32>, vector<128x384xf32>, vector<8x384xf32> -> vector<8x384xf32>
    %42 = vector.extract_strided_slice %40 {offsets = [0, 0], sizes = [8, 128], strides = [1, 1]} : vector<8x384xf32> to vector<8x128xf32>
    %43 = vector.extract_strided_slice %41 {offsets = [0, 0], sizes = [8, 128], strides = [1, 1]} : vector<8x384xf32> to vector<8x128xf32>
    %44 = arith.addf %42, %43 : vector<8x128xf32>
    %45 = arith.negf %44 : vector<8x128xf32>
    %46 = math.exp %45 : vector<8x128xf32>
    %cst_16 = arith.constant 1.000000e+00 : f32
    %47 = vector.broadcast %cst_16 : f32 to vector<8x128xf32>
    %48 = arith.addf %47, %46 : vector<8x128xf32>
    %49 = arith.divf %47, %48 : vector<8x128xf32>
    %50 = vector.extract_strided_slice %40 {offsets = [0, 128], sizes = [8, 128], strides = [1, 1]} : vector<8x384xf32> to vector<8x128xf32>
    %51 = vector.extract_strided_slice %41 {offsets = [0, 128], sizes = [8, 128], strides = [1, 1]} : vector<8x384xf32> to vector<8x128xf32>
    %52 = arith.addf %50, %51 : vector<8x128xf32>
    %53 = arith.negf %52 : vector<8x128xf32>
    %54 = math.exp %53 : vector<8x128xf32>
    %cst_17 = arith.constant 1.000000e+00 : f32
    %55 = vector.broadcast %cst_17 : f32 to vector<8x128xf32>
    %56 = arith.addf %55, %54 : vector<8x128xf32>
    %57 = arith.divf %55, %56 : vector<8x128xf32>
    %58 = vector.extract_strided_slice %40 {offsets = [0, 256], sizes = [8, 128], strides = [1, 1]} : vector<8x384xf32> to vector<8x128xf32>
    %59 = vector.extract_strided_slice %41 {offsets = [0, 256], sizes = [8, 128], strides = [1, 1]} : vector<8x384xf32> to vector<8x128xf32>
    %60 = arith.addf %59, %9 : vector<8x128xf32>
    %61 = arith.mulf %49, %60 : vector<8x128xf32>
    %62 = arith.addf %58, %61 : vector<8x128xf32>
    %63 = math.tanh %62 : vector<8x128xf32>
    %cst_18 = arith.constant 1.000000e+00 : f32
    %64 = vector.broadcast %cst_18 : f32 to vector<8x128xf32>
    %65 = arith.subf %64, %57 : vector<8x128xf32>
    %66 = arith.mulf %65, %63 : vector<8x128xf32>
    %67 = arith.mulf %57, %39 : vector<8x128xf32>
    %68 = arith.addf %66, %67 : vector<8x128xf32>
    %69 = vector.extract_strided_slice %5 {offsets = [16, 0], sizes = [8, 384], strides = [1, 1]} : vector<64x384xf32> to vector<8x384xf32>
    %cst_19 = arith.constant dense<0.000000e+00> : vector<8x384xf32>
    %70 = tpu.matmul %68, %6, %cst_19 {dimension_numbers = #tpu.dot_dimension_numbers<[1], [0], [0], [1], [0, 0, 1, 1], [], []>} : vector<8x128xf32>, vector<128x384xf32>, vector<8x384xf32> -> vector<8x384xf32>
    %71 = vector.extract_strided_slice %69 {offsets = [0, 0], sizes = [8, 128], strides = [1, 1]} : vector<8x384xf32> to vector<8x128xf32>
    %72 = vector.extract_strided_slice %70 {offsets = [0, 0], sizes = [8, 128], strides = [1, 1]} : vector<8x384xf32> to vector<8x128xf32>
    %73 = arith.addf %71, %72 : vector<8x128xf32>
    %74 = arith.negf %73 : vector<8x128xf32>
    %75 = math.exp %74 : vector<8x128xf32>
    %cst_20 = arith.constant 1.000000e+00 : f32
    %76 = vector.broadcast %cst_20 : f32 to vector<8x128xf32>
    %77 = arith.addf %76, %75 : vector<8x128xf32>
    %78 = arith.divf %76, %77 : vector<8x128xf32>
    %79 = vector.extract_strided_slice %69 {offsets = [0, 128], sizes = [8, 128], strides = [1, 1]} : vector<8x384xf32> to vector<8x128xf32>
    %80 = vector.extract_strided_slice %70 {offsets = [0, 128], sizes = [8, 128], strides = [1, 1]} : vector<8x384xf32> to vector<8x128xf32>
    %81 = arith.addf %79, %80 : vector<8x128xf32>
    %82 = arith.negf %81 : vector<8x128xf32>
    %83 = math.exp %82 : vector<8x128xf32>
    %cst_21 = arith.constant 1.000000e+00 : f32
    %84 = vector.broadcast %cst_21 : f32 to vector<8x128xf32>
    %85 = arith.addf %84, %83 : vector<8x128xf32>
    %86 = arith.divf %84, %85 : vector<8x128xf32>
    %87 = vector.extract_strided_slice %69 {offsets = [0, 256], sizes = [8, 128], strides = [1, 1]} : vector<8x384xf32> to vector<8x128xf32>
    %88 = vector.extract_strided_slice %70 {offsets = [0, 256], sizes = [8, 128], strides = [1, 1]} : vector<8x384xf32> to vector<8x128xf32>
    %89 = arith.addf %88, %9 : vector<8x128xf32>
    %90 = arith.mulf %78, %89 : vector<8x128xf32>
    %91 = arith.addf %87, %90 : vector<8x128xf32>
    %92 = math.tanh %91 : vector<8x128xf32>
    %cst_22 = arith.constant 1.000000e+00 : f32
    %93 = vector.broadcast %cst_22 : f32 to vector<8x128xf32>
    %94 = arith.subf %93, %86 : vector<8x128xf32>
    %95 = arith.mulf %94, %92 : vector<8x128xf32>
    %96 = arith.mulf %86, %68 : vector<8x128xf32>
    %97 = arith.addf %95, %96 : vector<8x128xf32>
    %98 = vector.extract_strided_slice %5 {offsets = [24, 0], sizes = [8, 384], strides = [1, 1]} : vector<64x384xf32> to vector<8x384xf32>
    %cst_23 = arith.constant dense<0.000000e+00> : vector<8x384xf32>
    %99 = tpu.matmul %97, %6, %cst_23 {dimension_numbers = #tpu.dot_dimension_numbers<[1], [0], [0], [1], [0, 0, 1, 1], [], []>} : vector<8x128xf32>, vector<128x384xf32>, vector<8x384xf32> -> vector<8x384xf32>
    %100 = vector.extract_strided_slice %98 {offsets = [0, 0], sizes = [8, 128], strides = [1, 1]} : vector<8x384xf32> to vector<8x128xf32>
    %101 = vector.extract_strided_slice %99 {offsets = [0, 0], sizes = [8, 128], strides = [1, 1]} : vector<8x384xf32> to vector<8x128xf32>
    %102 = arith.addf %100, %101 : vector<8x128xf32>
    %103 = arith.negf %102 : vector<8x128xf32>
    %104 = math.exp %103 : vector<8x128xf32>
    %cst_24 = arith.constant 1.000000e+00 : f32
    %105 = vector.broadcast %cst_24 : f32 to vector<8x128xf32>
    %106 = arith.addf %105, %104 : vector<8x128xf32>
    %107 = arith.divf %105, %106 : vector<8x128xf32>
    %108 = vector.extract_strided_slice %98 {offsets = [0, 128], sizes = [8, 128], strides = [1, 1]} : vector<8x384xf32> to vector<8x128xf32>
    %109 = vector.extract_strided_slice %99 {offsets = [0, 128], sizes = [8, 128], strides = [1, 1]} : vector<8x384xf32> to vector<8x128xf32>
    %110 = arith.addf %108, %109 : vector<8x128xf32>
    %111 = arith.negf %110 : vector<8x128xf32>
    %112 = math.exp %111 : vector<8x128xf32>
    %cst_25 = arith.constant 1.000000e+00 : f32
    %113 = vector.broadcast %cst_25 : f32 to vector<8x128xf32>
    %114 = arith.addf %113, %112 : vector<8x128xf32>
    %115 = arith.divf %113, %114 : vector<8x128xf32>
    %116 = vector.extract_strided_slice %98 {offsets = [0, 256], sizes = [8, 128], strides = [1, 1]} : vector<8x384xf32> to vector<8x128xf32>
    %117 = vector.extract_strided_slice %99 {offsets = [0, 256], sizes = [8, 128], strides = [1, 1]} : vector<8x384xf32> to vector<8x128xf32>
    %118 = arith.addf %117, %9 : vector<8x128xf32>
    %119 = arith.mulf %107, %118 : vector<8x128xf32>
    %120 = arith.addf %116, %119 : vector<8x128xf32>
    %121 = math.tanh %120 : vector<8x128xf32>
    %cst_26 = arith.constant 1.000000e+00 : f32
    %122 = vector.broadcast %cst_26 : f32 to vector<8x128xf32>
    %123 = arith.subf %122, %115 : vector<8x128xf32>
    %124 = arith.mulf %123, %121 : vector<8x128xf32>
    %125 = arith.mulf %115, %97 : vector<8x128xf32>
    %126 = arith.addf %124, %125 : vector<8x128xf32>
    %127 = vector.extract_strided_slice %5 {offsets = [32, 0], sizes = [8, 384], strides = [1, 1]} : vector<64x384xf32> to vector<8x384xf32>
    %cst_27 = arith.constant dense<0.000000e+00> : vector<8x384xf32>
    %128 = tpu.matmul %126, %6, %cst_27 {dimension_numbers = #tpu.dot_dimension_numbers<[1], [0], [0], [1], [0, 0, 1, 1], [], []>} : vector<8x128xf32>, vector<128x384xf32>, vector<8x384xf32> -> vector<8x384xf32>
    %129 = vector.extract_strided_slice %127 {offsets = [0, 0], sizes = [8, 128], strides = [1, 1]} : vector<8x384xf32> to vector<8x128xf32>
    %130 = vector.extract_strided_slice %128 {offsets = [0, 0], sizes = [8, 128], strides = [1, 1]} : vector<8x384xf32> to vector<8x128xf32>
    %131 = arith.addf %129, %130 : vector<8x128xf32>
    %132 = arith.negf %131 : vector<8x128xf32>
    %133 = math.exp %132 : vector<8x128xf32>
    %cst_28 = arith.constant 1.000000e+00 : f32
    %134 = vector.broadcast %cst_28 : f32 to vector<8x128xf32>
    %135 = arith.addf %134, %133 : vector<8x128xf32>
    %136 = arith.divf %134, %135 : vector<8x128xf32>
    %137 = vector.extract_strided_slice %127 {offsets = [0, 128], sizes = [8, 128], strides = [1, 1]} : vector<8x384xf32> to vector<8x128xf32>
    %138 = vector.extract_strided_slice %128 {offsets = [0, 128], sizes = [8, 128], strides = [1, 1]} : vector<8x384xf32> to vector<8x128xf32>
    %139 = arith.addf %137, %138 : vector<8x128xf32>
    %140 = arith.negf %139 : vector<8x128xf32>
    %141 = math.exp %140 : vector<8x128xf32>
    %cst_29 = arith.constant 1.000000e+00 : f32
    %142 = vector.broadcast %cst_29 : f32 to vector<8x128xf32>
    %143 = arith.addf %142, %141 : vector<8x128xf32>
    %144 = arith.divf %142, %143 : vector<8x128xf32>
    %145 = vector.extract_strided_slice %127 {offsets = [0, 256], sizes = [8, 128], strides = [1, 1]} : vector<8x384xf32> to vector<8x128xf32>
    %146 = vector.extract_strided_slice %128 {offsets = [0, 256], sizes = [8, 128], strides = [1, 1]} : vector<8x384xf32> to vector<8x128xf32>
    %147 = arith.addf %146, %9 : vector<8x128xf32>
    %148 = arith.mulf %136, %147 : vector<8x128xf32>
    %149 = arith.addf %145, %148 : vector<8x128xf32>
    %150 = math.tanh %149 : vector<8x128xf32>
    %cst_30 = arith.constant 1.000000e+00 : f32
    %151 = vector.broadcast %cst_30 : f32 to vector<8x128xf32>
    %152 = arith.subf %151, %144 : vector<8x128xf32>
    %153 = arith.mulf %152, %150 : vector<8x128xf32>
    %154 = arith.mulf %144, %126 : vector<8x128xf32>
    %155 = arith.addf %153, %154 : vector<8x128xf32>
    %156 = vector.extract_strided_slice %5 {offsets = [40, 0], sizes = [8, 384], strides = [1, 1]} : vector<64x384xf32> to vector<8x384xf32>
    %cst_31 = arith.constant dense<0.000000e+00> : vector<8x384xf32>
    %157 = tpu.matmul %155, %6, %cst_31 {dimension_numbers = #tpu.dot_dimension_numbers<[1], [0], [0], [1], [0, 0, 1, 1], [], []>} : vector<8x128xf32>, vector<128x384xf32>, vector<8x384xf32> -> vector<8x384xf32>
    %158 = vector.extract_strided_slice %156 {offsets = [0, 0], sizes = [8, 128], strides = [1, 1]} : vector<8x384xf32> to vector<8x128xf32>
    %159 = vector.extract_strided_slice %157 {offsets = [0, 0], sizes = [8, 128], strides = [1, 1]} : vector<8x384xf32> to vector<8x128xf32>
    %160 = arith.addf %158, %159 : vector<8x128xf32>
    %161 = arith.negf %160 : vector<8x128xf32>
    %162 = math.exp %161 : vector<8x128xf32>
    %cst_32 = arith.constant 1.000000e+00 : f32
    %163 = vector.broadcast %cst_32 : f32 to vector<8x128xf32>
    %164 = arith.addf %163, %162 : vector<8x128xf32>
    %165 = arith.divf %163, %164 : vector<8x128xf32>
    %166 = vector.extract_strided_slice %156 {offsets = [0, 128], sizes = [8, 128], strides = [1, 1]} : vector<8x384xf32> to vector<8x128xf32>
    %167 = vector.extract_strided_slice %157 {offsets = [0, 128], sizes = [8, 128], strides = [1, 1]} : vector<8x384xf32> to vector<8x128xf32>
    %168 = arith.addf %166, %167 : vector<8x128xf32>
    %169 = arith.negf %168 : vector<8x128xf32>
    %170 = math.exp %169 : vector<8x128xf32>
    %cst_33 = arith.constant 1.000000e+00 : f32
    %171 = vector.broadcast %cst_33 : f32 to vector<8x128xf32>
    %172 = arith.addf %171, %170 : vector<8x128xf32>
    %173 = arith.divf %171, %172 : vector<8x128xf32>
    %174 = vector.extract_strided_slice %156 {offsets = [0, 256], sizes = [8, 128], strides = [1, 1]} : vector<8x384xf32> to vector<8x128xf32>
    %175 = vector.extract_strided_slice %157 {offsets = [0, 256], sizes = [8, 128], strides = [1, 1]} : vector<8x384xf32> to vector<8x128xf32>
    %176 = arith.addf %175, %9 : vector<8x128xf32>
    %177 = arith.mulf %165, %176 : vector<8x128xf32>
    %178 = arith.addf %174, %177 : vector<8x128xf32>
    %179 = math.tanh %178 : vector<8x128xf32>
    %cst_34 = arith.constant 1.000000e+00 : f32
    %180 = vector.broadcast %cst_34 : f32 to vector<8x128xf32>
    %181 = arith.subf %180, %173 : vector<8x128xf32>
    %182 = arith.mulf %181, %179 : vector<8x128xf32>
    %183 = arith.mulf %173, %155 : vector<8x128xf32>
    %184 = arith.addf %182, %183 : vector<8x128xf32>
    %185 = vector.extract_strided_slice %5 {offsets = [48, 0], sizes = [8, 384], strides = [1, 1]} : vector<64x384xf32> to vector<8x384xf32>
    %cst_35 = arith.constant dense<0.000000e+00> : vector<8x384xf32>
    %186 = tpu.matmul %184, %6, %cst_35 {dimension_numbers = #tpu.dot_dimension_numbers<[1], [0], [0], [1], [0, 0, 1, 1], [], []>} : vector<8x128xf32>, vector<128x384xf32>, vector<8x384xf32> -> vector<8x384xf32>
    %187 = vector.extract_strided_slice %185 {offsets = [0, 0], sizes = [8, 128], strides = [1, 1]} : vector<8x384xf32> to vector<8x128xf32>
    %188 = vector.extract_strided_slice %186 {offsets = [0, 0], sizes = [8, 128], strides = [1, 1]} : vector<8x384xf32> to vector<8x128xf32>
    %189 = arith.addf %187, %188 : vector<8x128xf32>
    %190 = arith.negf %189 : vector<8x128xf32>
    %191 = math.exp %190 : vector<8x128xf32>
    %cst_36 = arith.constant 1.000000e+00 : f32
    %192 = vector.broadcast %cst_36 : f32 to vector<8x128xf32>
    %193 = arith.addf %192, %191 : vector<8x128xf32>
    %194 = arith.divf %192, %193 : vector<8x128xf32>
    %195 = vector.extract_strided_slice %185 {offsets = [0, 128], sizes = [8, 128], strides = [1, 1]} : vector<8x384xf32> to vector<8x128xf32>
    %196 = vector.extract_strided_slice %186 {offsets = [0, 128], sizes = [8, 128], strides = [1, 1]} : vector<8x384xf32> to vector<8x128xf32>
    %197 = arith.addf %195, %196 : vector<8x128xf32>
    %198 = arith.negf %197 : vector<8x128xf32>
    %199 = math.exp %198 : vector<8x128xf32>
    %cst_37 = arith.constant 1.000000e+00 : f32
    %200 = vector.broadcast %cst_37 : f32 to vector<8x128xf32>
    %201 = arith.addf %200, %199 : vector<8x128xf32>
    %202 = arith.divf %200, %201 : vector<8x128xf32>
    %203 = vector.extract_strided_slice %185 {offsets = [0, 256], sizes = [8, 128], strides = [1, 1]} : vector<8x384xf32> to vector<8x128xf32>
    %204 = vector.extract_strided_slice %186 {offsets = [0, 256], sizes = [8, 128], strides = [1, 1]} : vector<8x384xf32> to vector<8x128xf32>
    %205 = arith.addf %204, %9 : vector<8x128xf32>
    %206 = arith.mulf %194, %205 : vector<8x128xf32>
    %207 = arith.addf %203, %206 : vector<8x128xf32>
    %208 = math.tanh %207 : vector<8x128xf32>
    %cst_38 = arith.constant 1.000000e+00 : f32
    %209 = vector.broadcast %cst_38 : f32 to vector<8x128xf32>
    %210 = arith.subf %209, %202 : vector<8x128xf32>
    %211 = arith.mulf %210, %208 : vector<8x128xf32>
    %212 = arith.mulf %202, %184 : vector<8x128xf32>
    %213 = arith.addf %211, %212 : vector<8x128xf32>
    %214 = vector.extract_strided_slice %5 {offsets = [56, 0], sizes = [8, 384], strides = [1, 1]} : vector<64x384xf32> to vector<8x384xf32>
    %cst_39 = arith.constant dense<0.000000e+00> : vector<8x384xf32>
    %215 = tpu.matmul %213, %6, %cst_39 {dimension_numbers = #tpu.dot_dimension_numbers<[1], [0], [0], [1], [0, 0, 1, 1], [], []>} : vector<8x128xf32>, vector<128x384xf32>, vector<8x384xf32> -> vector<8x384xf32>
    %216 = vector.extract_strided_slice %214 {offsets = [0, 0], sizes = [8, 128], strides = [1, 1]} : vector<8x384xf32> to vector<8x128xf32>
    %217 = vector.extract_strided_slice %215 {offsets = [0, 0], sizes = [8, 128], strides = [1, 1]} : vector<8x384xf32> to vector<8x128xf32>
    %218 = arith.addf %216, %217 : vector<8x128xf32>
    %219 = arith.negf %218 : vector<8x128xf32>
    %220 = math.exp %219 : vector<8x128xf32>
    %cst_40 = arith.constant 1.000000e+00 : f32
    %221 = vector.broadcast %cst_40 : f32 to vector<8x128xf32>
    %222 = arith.addf %221, %220 : vector<8x128xf32>
    %223 = arith.divf %221, %222 : vector<8x128xf32>
    %224 = vector.extract_strided_slice %214 {offsets = [0, 128], sizes = [8, 128], strides = [1, 1]} : vector<8x384xf32> to vector<8x128xf32>
    %225 = vector.extract_strided_slice %215 {offsets = [0, 128], sizes = [8, 128], strides = [1, 1]} : vector<8x384xf32> to vector<8x128xf32>
    %226 = arith.addf %224, %225 : vector<8x128xf32>
    %227 = arith.negf %226 : vector<8x128xf32>
    %228 = math.exp %227 : vector<8x128xf32>
    %cst_41 = arith.constant 1.000000e+00 : f32
    %229 = vector.broadcast %cst_41 : f32 to vector<8x128xf32>
    %230 = arith.addf %229, %228 : vector<8x128xf32>
    %231 = arith.divf %229, %230 : vector<8x128xf32>
    %232 = vector.extract_strided_slice %214 {offsets = [0, 256], sizes = [8, 128], strides = [1, 1]} : vector<8x384xf32> to vector<8x128xf32>
    %233 = vector.extract_strided_slice %215 {offsets = [0, 256], sizes = [8, 128], strides = [1, 1]} : vector<8x384xf32> to vector<8x128xf32>
    %234 = arith.addf %233, %9 : vector<8x128xf32>
    %235 = arith.mulf %223, %234 : vector<8x128xf32>
    %236 = arith.addf %232, %235 : vector<8x128xf32>
    %237 = math.tanh %236 : vector<8x128xf32>
    %cst_42 = arith.constant 1.000000e+00 : f32
    %238 = vector.broadcast %cst_42 : f32 to vector<8x128xf32>
    %239 = arith.subf %238, %231 : vector<8x128xf32>
    %240 = arith.mulf %239, %237 : vector<8x128xf32>
    %241 = arith.mulf %231, %213 : vector<8x128xf32>
    %242 = arith.addf %240, %241 : vector<8x128xf32>
    %243 = vector.extract_strided_slice %39 {offsets = [0, 0], sizes = [8, 32], strides = [1, 1]} : vector<8x128xf32> to vector<8x32xf32>
    %244 = vector.extract_strided_slice %68 {offsets = [0, 0], sizes = [8, 32], strides = [1, 1]} : vector<8x128xf32> to vector<8x32xf32>
    %245 = vector.extract_strided_slice %97 {offsets = [0, 0], sizes = [8, 32], strides = [1, 1]} : vector<8x128xf32> to vector<8x32xf32>
    %246 = vector.extract_strided_slice %126 {offsets = [0, 0], sizes = [8, 32], strides = [1, 1]} : vector<8x128xf32> to vector<8x32xf32>
    %247 = vector.extract_strided_slice %155 {offsets = [0, 0], sizes = [8, 32], strides = [1, 1]} : vector<8x128xf32> to vector<8x32xf32>
    %248 = vector.extract_strided_slice %184 {offsets = [0, 0], sizes = [8, 32], strides = [1, 1]} : vector<8x128xf32> to vector<8x32xf32>
    %249 = vector.extract_strided_slice %213 {offsets = [0, 0], sizes = [8, 32], strides = [1, 1]} : vector<8x128xf32> to vector<8x32xf32>
    %250 = vector.extract_strided_slice %242 {offsets = [0, 0], sizes = [8, 32], strides = [1, 1]} : vector<8x128xf32> to vector<8x32xf32>
    %251 = tpu.concatenate %243, %244, %245, %246, %247, %248, %249, %250 in 1 : vector<8x32xf32>, vector<8x32xf32>, vector<8x32xf32>, vector<8x32xf32>, vector<8x32xf32>, vector<8x32xf32>, vector<8x32xf32>, vector<8x32xf32> -> vector<8x256xf32>
    tpu.wait_dma2 semaphore(%arg12 : memref<!tpu.dma_semaphore, #tpu.memory_space<semaphore_mem>>) src(%arg6 : memref<256x640xbf16, #tpu.memory_space<any>>) dst(%arg11 : memref<256x640xbf16, #tpu.memory_space<vmem>>)
    %252 = arith.truncf %251 : vector<8x256xf32> to vector<8x256xbf16>
    %c0_43 = arith.constant 0 : index
    %c0_44 = arith.constant 0 : index
    %253 = vector.load %arg11[%c0_43, %c0_44] : memref<256x640xbf16, #tpu.memory_space<vmem>>, vector<256x640xbf16>
    %cst_45 = arith.constant dense<0.000000e+00> : vector<8x640xf32>
    %254 = tpu.matmul %252, %253, %cst_45 {dimension_numbers = #tpu.dot_dimension_numbers<[1], [0], [0], [1], [0, 0, 1, 1], [], []>} : vector<8x256xbf16>, vector<256x640xbf16>, vector<8x640xf32> -> vector<8x640xf32>
    %c0_46 = arith.constant 0 : index
    %c0_47 = arith.constant 0 : index
    %255 = vector.load %arg7[%c0_46, %c0_47] : memref<1x640xf32, #tpu.memory_space<vmem>>, vector<1x640xf32>
    %256 = vector.broadcast %255 : vector<1x640xf32> to vector<8x640xf32>
    %257 = arith.addf %254, %256 : vector<8x640xf32>
    %258 = arith.negf %257 : vector<8x640xf32>
    %259 = math.exp %258 : vector<8x640xf32>
    %cst_48 = arith.constant 1.000000e+00 : f32
    %260 = vector.broadcast %cst_48 : f32 to vector<8x640xf32>
    %261 = arith.addf %260, %259 : vector<8x640xf32>
    %262 = arith.divf %260, %261 : vector<8x640xf32>
    %c0_49 = arith.constant 0 : index
    %c0_50 = arith.constant 0 : index
    %263 = vector.load %arg8[%c0_49, %c0_50] : memref<1x640xf32, #tpu.memory_space<vmem>>, vector<1x640xf32>
    %264 = vector.broadcast %263 : vector<1x640xf32> to vector<8x640xf32>
    %265 = arith.mulf %262, %264 : vector<8x640xf32>
    %cst_51 = arith.constant dense<0.000000e+00> : vector<8xf32>
    %266 = vector.multi_reduction <add>, %265, %cst_51 [1] : vector<8x640xf32> to vector<8xf32>
    %267 = vector.shape_cast %266 : vector<8xf32> to vector<8x1xf32>
    %c0_52 = arith.constant 0 : index
    %c0_53 = arith.constant 0 : index
    %268 = vector.load %arg9[%c0_52, %c0_53] : memref<1x1xf32, #tpu.memory_space<vmem>>, vector<1x1xf32>
    %269 = vector.broadcast %268 : vector<1x1xf32> to vector<8x1xf32>
    %270 = arith.addf %267, %269 : vector<8x1xf32>
    %271 = arith.negf %270 : vector<8x1xf32>
    %272 = math.exp %271 : vector<8x1xf32>
    %cst_54 = arith.constant 1.000000e+00 : f32
    %273 = vector.broadcast %cst_54 : f32 to vector<8x1xf32>
    %274 = arith.addf %273, %272 : vector<8x1xf32>
    %275 = arith.divf %273, %274 : vector<8x1xf32>
    %c0_55 = arith.constant 0 : index
    %c0_56 = arith.constant 0 : index
    %276 = vector.load %arg10[%c0_55, %c0_56] : memref<8x1xf32, #tpu.memory_space<vmem>>, vector<8x1xf32>
    tpu.vector_store %arg10[%c0_55, %c0_56], %275 {strides = array<i32>} : memref<8x1xf32, #tpu.memory_space<vmem>>, vector<8x1xf32>,
    return
  }
}

</mosaic_0001>

<bundles_post_ra>
// kernel: tpu_custom_call.1
= control target key start
LH: loop header
LB: loop body
LE: loop exit
PB: predicated region body
PF: predicated region fallthrough
CT: control target
= control target key end

     0   :  { %s3869_s0 = inlined_call_operand.vmem [shape: f32[64,16], index: 0, kind: input, shape index: {}]   ;;  %s3870_s1 = inlined_call_operand.vmem [shape: f32[8,128], index: 1, kind: input, shape index: {}]   ;;  %s3871_s2 = inlined_call_operand.vmem [shape: f32[16,384], index: 2, kind: input, shape index: {}]   ;;  %s3872_s3 = inlined_call_operand.hbm [shape: f32[128,384], index: 3, kind: input, shape index: {}]   ;;  %s3873_s4 = inlined_call_operand.vmem [shape: f32[1,384], index: 4, kind: input, shape index: {}]   ;;  %s3874_s5 = inlined_call_operand.vmem [shape: f32[1,128], index: 5, kind: input, shape index: {}]   ;;  %s3875_s6 = inlined_call_operand.hbm [shape: bf16[256,640], index: 6, kind: input, shape index: {}]   ;;  %s3876_s7 = inlined_call_operand.vmem [shape: f32[1,640], index: 7, kind: input, shape index: {}]   ;;  %s3877_s8 = inlined_call_operand.vmem [shape: f32[1,640], index: 8, kind: input, shape index: {}]   ;;  %s3878_s9 = inlined_call_operand.<no memory space> [shape: f32[1,1], index: 9, kind: input, shape index: {}]   ;;  %s3879_s10 = inlined_call_operand.vmem [shape: f32[8,1], index: 10, kind: output, shape index: {}]  }
   0x1   :  { %v15_v0 = vstv %s3878_s9 }
   0x2   :  { %16 = vst [vmem:[#allocation4] sm:$0x1] %v15_v0 }
   0x3   :  { %17 = vsyncpa [#allocation6], 0  ;;  %s3240_s15 = smov [#allocation5]   ;;  %s3214_s19 = scalar_lea.hbm %s3872_s3, 6144 }
   0x4   :  { %s29_s16 = sshll.u32 %s3240_s15, 4  ;;  %p3215_p0 = scmp.ne.s32.totalorder %s3872_s3, %s3214_s19  ;;  %s30_s16 = int_to_ptr.vmem [resolvable:$true] %s29_s16 }
   0x5   :  { %p3218_p1 = scmp.lt.u32.totalorder %s3214_s19, %s3872_s3 }
   0x7   :  { %p3220_p2 = pnand %p3218_p1, %p3215_p0 }
   0x9   :  { %3223 = shalt.err (!%p3220_p2)
}
   0xa   :  { %s3224_s9 = scalar_lea.vmem %s30_s16, 6144  ;;  %p3229_p4 = scmp.lt.s32.totalorder %s30_s16, %s30_s16 }
   0xb   :  { %p3225_p3 = scmp.ne.s32.totalorder %s30_s16, %s3224_s9  ;;  %p3230_p5 = scmp.lt.s32.totalorder %s3224_s9, %s3224_s9 }
   0xd   :  { %p3231_p6 = por %p3230_p5, %p3229_p4 }
   0xf   :  { %p3232_p7 = pnand %p3231_p6, %p3225_p3 }
  0x11   :  { %3235 = shalt.err (!%p3232_p7)
}
  0x12   :  { %s3241_s24 = smov 384   ;;  %s3242_s25 = smov 24  }
  0x13   :  { %35 = dma.hbm_to_vmem [thread:$0]  %s3872_s3, 6144, %s30_s16, [#allocation6], %s3241_s24, %s3241_s24, %s3242_s25  }
  0x14   :  { %3236 = dma.done.wait [#allocation6], 6144  }
  0x15   :  { %3237 = vsyncadd [#allocation6], 4294961152  ;;  %s54_s28 = sld [smem:[#allocation0]]   ;;  %s3243_s29 = smov 640   ;;  %v3244_v1 = vmov 0.0   ;;  %vm116_vm0 = vcmask 130048  }
  0x16   :  { %66 = sst [smem:[#allocation8]] %s3243_s29  ;;  %205 = vmatprep.mubr.f32.mxu0 %v3244_v1  ;;  %s3245_s30 = smov 5   ;;  %v3254_v49 = vmov 0.0|0.0   ;;  %vm3255_vm1 = vmmov 0   ;;  %vm1743_vm2 = vcmask 261120   ;;  %vm1745_vm3 = vcmask 523264  }
  0x17   :  { %68 = sst [smem:[#allocation8 + $0x1]] %s3243_s29  ;;  %s3246_s11 = smov 64   ;;  %vm1747_vm4 = vcmask 785408  }
  0x18   :  { %70 = sst [smem:[#allocation8 + $0x2]] %s3245_s30  ;;  %s3247_s12 = smov 128  }
  0x19   :  { %72 = sst [smem:[#allocation8 + $0x3]] %s3246_s11  ;;  %s3248_s13 = smov 2  }
  0x1a   :  { %74 = sst [smem:[#allocation8 + $0x4]] %s3247_s12  ;;  %s3249_s3 = smov 320  }
  0x1b   :  { %76 = sst [smem:[#allocation8 + $0x5]] %s3248_s13  ;;  %s2082_s14 = sshll.u32 %s54_s28, 26 }
  0x1c   :  { %78 = sst [smem:[#allocation8 + $0x6]] %s3249_s3  ;;  %s2083_s15 = sadd.s32 134217728, %s2082_s14 }
  0x1d   :  { %80 = sst [smem:[#allocation8 + $0x7]] %s3246_s11  ;;  %s3250_s16 = smov 4  }
  0x1e   :  { %82 = sst [smem:[#allocation8 + $0x8]] %s3250_s16  ;;  %s3251_s17 = smov [#allocation2]  }
  0x1f   :  { %s62_s18 = sshll.u32 %s3251_s17, 4  ;;  %s3252_s19 = smov [#allocation3]   ;;  %s63_s18 = int_to_ptr.vmem [resolvable:$true] %s62_s18 }
  0x20   :  { %s3253_s20 = smov [#allocation7]  }
  0x21   :  { %84 = dma.general %s3875_s6, 10240, %s63_s18, %s3252_s19, %s3253_s20, [#allocation8], %s2083_s15, 0  }
  0x22   :  { %v94_v2 = vld [vmem:[%s3871_s2 + $0x8] sm:$0xff]  ;;  %v97_v3 = vld [vmem:[%s3871_s2 + $0x20] sm:$0xff]  ;;  %v96_v6 = vld [vmem:[%s3871_s2 + $0x18] sm:$0xff] }
  0x23   :  { %v93_v4 = vld [vmem:[%s3871_s2] sm:$0xff]  ;;  %v2589_v5 = vpack.c.bf16 %v97_v3, %v94_v2  ;;  %v360_v8 = vld [vmem:[#allocation5 + $0x8] sm:$0xff]  ;;  %v369_v15 = vld [vmem:[#allocation5 + $0x50] sm:$0xff] }
  0x24   :  { %v85_v7 = vld [vmem:[%s3869_s0] sm:$0xff]  ;;  %v2591_v9 = vpack.c.bf16 %v96_v6, %v93_v4  ;;  %v365_v18 = vld [vmem:[#allocation5 + $0x30] sm:$0xff]  ;;  %v368_v19 = vld [vmem:[#allocation5 + $0x48] sm:$0xff] }
  0x25   :  { %v363_v10 = vld [vmem:[#allocation5 + $0x20] sm:$0xff]  ;;  %v362_v12 = vld [vmem:[#allocation5 + $0x18] sm:$0xff]  ;;  %2297 = vmatprep.mubr.msk.f32.mxu1 %vm116_vm0, %v85_v7  ;;  %2590 = vmatprep.subr.bf16.mxu0 %v2589_v5  ;;  %v372_v20 = vld [vmem:[#allocation5 + $0x68] sm:$0xff]  ;;  %v3363_v23 = vpack.c.bf16 %v368_v19, %v365_v18 }
  0x26   :  { %v359_v11 = vld [vmem:[#allocation5] sm:$0xff]  ;;  %v3350_v13 = vpack.c.bf16 %v363_v10, %v360_v8  ;;  %v366_v14 = vld [vmem:[#allocation5 + $0x38] sm:$0xff]  ;;  %2592 = vmatpush1.bf16.msra.mxu0 %v2591_v9  ;;  %v381_v28 = vld [vmem:[#allocation5 + $0xb0] sm:$0xff] }
  0x27   :  { %v3352_v16 = vpack.c.bf16 %v362_v12, %v359_v11  ;;  %v3355_v17 = vpack.c.bf16 %v369_v15, %v366_v14  ;;  %v375_v21 = vld [vmem:[#allocation5 + $0x80] sm:$0xff]  ;;  %v374_v26 = vld [vmem:[#allocation5 + $0x78] sm:$0xff]  ;;  %v95_v29 = vld [vmem:[%s3871_s2 + $0x10] sm:$0xff] }
  0x28   :  { %2598 = vmatprep.subr.bf16.mxu0 %v3350_v13  ;;  %v86_v22 = vld [vmem:[%s3869_s0 + $0x8] sm:$0xff]  ;;  %v3366_v24 = vpack.c.bf16 %v375_v21, %v372_v20  ;;  %v378_v27 = vld [vmem:[#allocation5 + $0x98] sm:$0xff]  ;;  %v87_v31 = vld [vmem:[%s3869_s0 + $0x10] sm:$0xff] }
  0x29   :  { %2084 = vmatmul.mubr.msk.f32.vlgmr.msra.gmra.mrb[0].mxu0 %vm116_vm0, %v85_v7  ;;  %v371_v25 = vld [vmem:[#allocation5 + $0x60] sm:$0xff]  ;;  %v3383_v34 = vpack.c.bf16 %v381_v28, %v378_v27  ;;  %v377_v35 = vld [vmem:[#allocation5 + $0x90] sm:$0xff]  ;;  %v380_v36 = vld [vmem:[#allocation5 + $0xa8] sm:$0xff] }
  0x2a   :  { %2600 = vmatpush1.bf16.msra.mxu0 %v3352_v16  ;;  %211 = vmatprep.mubr.f32.mxu0 %v3244_v1  ;;  %v98_v30 = vld [vmem:[%s3871_s2 + $0x28] sm:$0xff]  ;;  %v3380_v32 = vpack.c.bf16 %v374_v26, %v371_v25  ;;  %v361_v37 = vld [vmem:[#allocation5 + $0x10] sm:$0xff]  ;;  %v3393_v43 = vpack.c.bf16 %v380_v36, %v377_v35  ;;  %v370_v45 = vld [vmem:[#allocation5 + $0x58] sm:$0xff] }
  0x2b   :  { %2602 = vmatprep.subr.bf16.mxu0 %v3355_v17  ;;  %v2593_v33 = vpack.c.bf16 %v98_v30, %v95_v29  ;;  %v384_v38 = vld [vmem:[#allocation5 + $0xc8] sm:$0xff]  ;;  %v387_v39 = vld [vmem:[#allocation5 + $0xe0] sm:$0xff]  ;;  %v88_v42 = vld [vmem:[%s3869_s0 + $0x18] sm:$0xff] }
  0x2c   :  { %v364_v40 = vld [vmem:[#allocation5 + $0x28] sm:$0xff]  ;;  %v367_v44 = vld [vmem:[#allocation5 + $0x40] sm:$0xff]  ;;  %v3396_v46 = vpack.c.bf16 %v387_v39, %v384_v38  ;;  %v386_v48 = vld [vmem:[#allocation5 + $0xd8] sm:$0xff] }
  0x2d   :  { %2085 = vmatmul.mubr.msk.f32.gmra.mrb[2].mxu0 %vm116_vm0, %v86_v22  ;;  %2594 = vmatprep.subr.bf16.mxu1 %v2593_v33  ;;  %v3386_v41 = vpack.c.bf16 %v364_v40, %v361_v37  ;;  %v383_v47 = vld [vmem:[#allocation5 + $0xc0] sm:$0xff]  ;;  %v390_v50 = vld [vmem:[#allocation5 + $0xf8] sm:$0xff]  ;;  %v393_v51 = vld [vmem:[#allocation5 + $0x110] sm:$0xff]  ;;  %v3402_v52 = vpack.c.bf16 %v370_v45, %v367_v44  ;;  %v101_v37 = vlaneseq }
  0x2e   :  { %2604 = vmatpush1.bf16.msra.mxu0 %v3363_v23  ;;  %217 = vmatprep.mubr.f32.mxu0 %v3244_v1  ;;  %v89_v53 = vld [vmem:[%s3869_s0 + $0x20] sm:$0xff]  ;;  %v3409_v54 = vpack.c.bf16 %v386_v48, %v383_v47  ;;  %v373_v55 = vld [vmem:[#allocation5 + $0x70] sm:$0xff]  ;;  %v376_v56 = vld [vmem:[#allocation5 + $0x88] sm:$0xff]  ;;  %v3412_v57 = vpack.c.bf16 %v393_v51, %v390_v50 }
  0x2f   :  { %2606 = vmatprep.subr.bf16.mxu0 %v3366_v24  ;;  %2596 = vmatpush3.bf16.msra.mxu1 %v2593_v33  ;;  %v389_v58 = vld [vmem:[#allocation5 + $0xf0] sm:$0xff]  ;;  %v392_v59 = vld [vmem:[#allocation5 + $0x108] sm:$0xff]  ;;  %v399_v61 = vld [vmem:[#allocation5 + $0x140] sm:$0xff]  ;;  %v3418_v62 = vpack.c.bf16 %v376_v56, %v373_v55  ;;  %v3526_v38 = vshrl.u32 %v101_v37, 7 }
  0x30   :  { %2629 = vmatprep.subr.bf16.mxu1 %v3254_v49  ;;  %v396_v60 = vld [vmem:[#allocation5 + $0x128] sm:$0xff]  ;;  %v3425_v0 = vpack.c.bf16 %v392_v59, %v389_v58  ;;  %v379_v2 = vld [vmem:[#allocation5 + $0xa0] sm:$0xff]  ;;  %v382_v3 = vld [vmem:[#allocation5 + $0xb8] sm:$0xff] }
  0x31   :  { %2086 = vmatmul.mubr.msk.f32.gmra.mrb[4].mxu0 %vm116_vm0, %v87_v31  ;;  %v90_v63 = vld [vmem:[%s3869_s0 + $0x28] sm:$0xff]  ;;  %v3428_v4 = vpack.c.bf16 %v399_v61, %v396_v60  ;;  %v398_v6 = vld [vmem:[#allocation5 + $0x138] sm:$0xff]  ;;  %v405_v8 = vld [vmem:[#allocation5 + $0x170] sm:$0xff]  ;;  %v3434_v9 = vpack.c.bf16 %v382_v3, %v379_v2  ;;  %v3529_v39 = vsub.s32 2, %v3526_v38  ;;  %v3542_v55 = vsub.s32 0, %v3526_v38 }
  0x32   :  { %2608 = vmatpush1.bf16.msra.mxu0 %v3380_v32  ;;  %223 = vmatprep.mubr.f32.mxu0 %v3244_v1  ;;  %v395_v5 = vld [vmem:[#allocation5 + $0x120] sm:$0xff]  ;;  %v402_v7 = vld [vmem:[#allocation5 + $0x158] sm:$0xff]  ;;  %v91_v10 = vld [vmem:[%s3869_s0 + $0x30] sm:$0xff]  ;;  %v3545_v58 = vsub.s32 1, %v3526_v38 }
  0x33   :  { %2610 = vmatprep.subr.bf16.mxu0 %v3383_v34  ;;  %2298 = vmatmul.mubr.msk.f32.vlgmr.msra.gmra.mrb[0].mxu1 %vm116_vm0, %v86_v22  ;;  %v3441_v11 = vpack.c.bf16 %v398_v6, %v395_v5  ;;  %v385_v12 = vld [vmem:[#allocation5 + $0xd0] sm:$0xff]  ;;  %v388_v14 = vld [vmem:[#allocation5 + $0xe8] sm:$0xff]  ;;  %v3444_v15 = vpack.c.bf16 %v405_v8, %v402_v7  ;;  %v391_v25 = vld [vmem:[#allocation5 + $0x100] sm:$0xff] }
  0x34   :  { %2631 = vmatpush3.bf16.msra.mxu1 %v3386_v41  ;;  %2300 = vmatprep.mubr.msk.f32.mxu1 %vm116_vm0, %v87_v31  ;;  %v401_v18 = vld [vmem:[#allocation5 + $0x150] sm:$0xff]  ;;  %v404_v19 = vld [vmem:[#allocation5 + $0x168] sm:$0xff]  ;;  %v3450_v20 = vpack.c.bf16 %v388_v14, %v385_v12  ;;  %v394_v26 = vld [vmem:[#allocation5 + $0x118] sm:$0xff] }
  0x35   :  { %2087 = vmatmul.mubr.msk.f32.gmra.mrb[6].mxu0 %vm116_vm0, %v88_v42  ;;  %2632 = vmatprep.subr.bf16.mxu1 %v3254_v49  ;;  %v92_v21 = vld [vmem:[%s3869_s0 + $0x38] sm:$0xff]  ;;  %v3457_v22 = vpack.c.bf16 %v404_v19, %v401_v18  ;;  %v3464_v27 = vpack.c.bf16 %v394_v26, %v391_v25  ;;  %v3471_v28 = vld [vmem:[%s3870_s1] sm:$0xff]  ;;  %v400_v30 = vld [vmem:[#allocation5 + $0x148] sm:$0xff] }
  0x36   :  { %2612 = vmatpush1.bf16.msra.mxu0 %v3393_v43  ;;  %229 = vmatprep.mubr.f32.mxu0 %v3244_v1  ;;  %v397_v29 = vld [vmem:[#allocation5 + $0x130] sm:$0xff]  ;;  %v403_v33 = vld [vmem:[#allocation5 + $0x160] sm:$0xff]  ;;  %v406_v35 = vld [vmem:[#allocation5 + $0x178] sm:$0xff] }
  0x37   :  { %2614 = vmatprep.subr.bf16.mxu0 %v3396_v46  ;;  %2301 = vmatmul.mubr.msk.f32.gmra.mrb[2].mxu1 %vm116_vm0, %v88_v42  ;;  %v3479_v31 = vpack.c.bf16 %v400_v30, %v397_v29  ;;  %v3488_v36 = vpack.c.bf16 %v406_v35, %v403_v33  ;;  %v99_v40 = vld [vmem:[%s3873_s4] sm:$0x7] }
  0x38   :  { %2634 = vmatpush3.bf16.msra.mxu1 %v3402_v52  ;;  %2303 = vmatprep.mubr.msk.f32.mxu1 %vm116_vm0, %v89_v53  ;;  %v112_v42 = vrot.slane %v99_v40, %v3529_v39  ;;  %v3550_v61 = vrot.slane %v99_v40, %v3542_v55  ;;  %v3555_v5 = vrot.slane %v99_v40, %v3545_v58  ;;  %v3566_v33 = vld [vmem:[%s3874_s5] ss:$0 sm:$0xff]  ;;  %s3256_s5 = smov 32  }
  0x39   :  { %2088 = vmatmul.mubr.msk.f32.gmra.mrb[8].mxu0 %vm116_vm0, %v89_v53  ;;  %2635 = vmatprep.subr.bf16.mxu1 %v3254_v49 }
  0x3a   :  { %2616 = vmatpush1.bf16.msra.mxu0 %v3409_v54  ;;  %235 = vmatprep.mubr.f32.mxu0 %v3244_v1 }
  0x3b   :  { %2618 = vmatprep.subr.bf16.mxu0 %v3412_v57  ;;  %2304 = vmatmul.mubr.msk.f32.gmra.mrb[4].mxu1 %vm116_vm0, %v90_v63 }
  0x3c   :  { %2637 = vmatpush3.bf16.msra.mxu1 %v3418_v62  ;;  %2306 = vmatprep.mubr.msk.f32.mxu1 %vm116_vm0, %v91_v10 }
  0x3d   :  { %2089 = vmatmul.mubr.msk.f32.gmra.mrb[10].mxu0 %vm116_vm0, %v90_v63  ;;  %2638 = vmatprep.subr.bf16.mxu1 %v3254_v49 }
  0x3e   :  { %2620 = vmatpush1.bf16.msra.mxu0 %v3425_v0  ;;  %241 = vmatprep.mubr.f32.mxu0 %v3244_v1 }
  0x3f   :  { %2622 = vmatprep.subr.bf16.mxu0 %v3428_v4  ;;  %2307 = vmatmul.mubr.msk.f32.gmra.mrb[6].mxu1 %vm116_vm0, %v92_v21 }
  0x40   :  { %2640 = vmatpush3.bf16.msra.mxu1 %v3434_v9  ;;  %2341 = vmatprep.mubr.msk.f32.mxu1 %vm3255_vm1, %v3244_v1 }
  0x41   :  { %2090 = vmatmul.mubr.msk.f32.gmra.mrb[12].mxu0 %vm116_vm0, %v91_v10  ;;  %2641 = vmatprep.subr.bf16.mxu1 %v3254_v49 }
  0x42   :  { %2624 = vmatpush1.bf16.msra.mxu0 %v3441_v11  ;;  %247 = vmatprep.mubr.f32.mxu0 %v3244_v1 }
  0x43   :  { %2626 = vmatprep.subr.bf16.mxu0 %v3444_v15 }
  0x44   :  { %2643 = vmatpush3.bf16.msra.mxu1 %v3450_v20 }
  0x45   :  { %2091 = vmatmul.mubr.msk.f32.gmra.mrb[14].mxu0 %vm116_vm0, %v92_v21  ;;  %2644 = vmatprep.subr.bf16.mxu1 %v3254_v49 }
  0x46   :  { %2628 = vmatpush1.bf16.msra.mxu0 %v3457_v22  ;;  %479 = vmatprep.mubr.f32.mxu0 %v3244_v1 }
  0x47   :  { %2654 = vmatprep.subr.bf16.mxu0 %v3350_v13 }
  0x48   :  { %2646 = vmatpush3.bf16.msra.mxu1 %v3464_v27 }
  0x49   :  { %480 = vmatmul.mubr.f32.vlgmr.msra.gmra.mrb[0].mxu0 %v3471_v28  ;;  %2647 = vmatprep.subr.bf16.mxu1 %v3254_v49 }
  0x4a   :  { %2656 = vmatpush1.bf16.msra.mxu0 %v3352_v16  ;;  %642 = vmatprep.mubr.f32.mxu0 %v3244_v1 }
  0x4b   :  { %2658 = vmatprep.subr.bf16.mxu0 %v3355_v17 }
  0x4c   :  { %2649 = vmatpush3.bf16.msra.mxu1 %v3479_v31 }
  0x4d   :  { %2650 = vmatprep.subr.bf16.mxu1 %v3254_v49 }
  0x4e   :  { %2660 = vmatpush1.bf16.msra.mxu0 %v3363_v23 }
  0x4f   :  { %2662 = vmatprep.subr.bf16.mxu0 %v3366_v24 }
  0x50   :  { %2652 = vmatpush3.bf16.msra.mxu1 %v3488_v36 }
  0x51   :  { %2685 = vmatprep.subr.bf16.mxu1 %v3254_v49 }
  0x52   :  { %2664 = vmatpush1.bf16.msra.mxu0 %v3380_v32 }
  0x53   :  { %2342 = vmatmul.mubr.f32.vlgmr.msra.gmra.mrb[8].mxu1 %v3471_v28  ;;  %2666 = vmatprep.subr.bf16.mxu0 %v3383_v34 }
  0x54   :  { %2687 = vmatpush3.bf16.msra.mxu1 %v3386_v41  ;;  %2376 = vmatprep.mubr.msk.f32.mxu1 %vm3255_vm1, %v3244_v1 }
  0x55   :  { %2688 = vmatprep.subr.bf16.mxu1 %v3254_v49 }
  0x56   :  { %2668 = vmatpush1.bf16.msra.mxu0 %v3393_v43 }
  0x57   :  { %2670 = vmatprep.subr.bf16.mxu0 %v3396_v46 }
  0x58   :  { %2690 = vmatpush3.bf16.msra.mxu1 %v3402_v52 }
  0x59   :  { %2691 = vmatprep.subr.bf16.mxu1 %v3254_v49 }
  0x5a   :  { %2672 = vmatpush1.bf16.msra.mxu0 %v3409_v54 }
  0x5b   :  { %2674 = vmatprep.subr.bf16.mxu0 %v3412_v57 }
  0x5c   :  { %2693 = vmatpush3.bf16.msra.mxu1 %v3418_v62 }
  0x5d   :  { %2694 = vmatprep.subr.bf16.mxu1 %v3254_v49 }
  0x5e   :  { %2676 = vmatpush1.bf16.msra.mxu0 %v3425_v0 }
  0x5f   :  { %2678 = vmatprep.subr.bf16.mxu0 %v3428_v4 }
  0x60   :  { %2696 = vmatpush3.bf16.msra.mxu1 %v3434_v9 }
  0x61   :  { %2697 = vmatprep.subr.bf16.mxu1 %v3254_v49 }
  0x62   :  { %2680 = vmatpush1.bf16.msra.mxu0 %v3441_v11 }
  0x63   :  { %2682 = vmatprep.subr.bf16.mxu0 %v3444_v15 }
  0x64   :  { %2699 = vmatpush3.bf16.msra.mxu1 %v3450_v20 }
  0x65   :  { %2700 = vmatprep.subr.bf16.mxu1 %v3254_v49 }
  0x66   :  { %2684 = vmatpush1.bf16.msra.mxu0 %v3457_v22 }
  0x67   :  { %2710 = vmatprep.subr.bf16.mxu0 %v3350_v13 }
  0x68   :  { %2702 = vmatpush3.bf16.msra.mxu1 %v3464_v27 }
  0x69   :  { %2703 = vmatprep.subr.bf16.mxu1 %v3254_v49 }
  0x6c   :  { %2705 = vmatpush3.bf16.msra.mxu1 %v3479_v31 }
  0x6d   :  { %2706 = vmatprep.subr.bf16.mxu1 %v3254_v49 }
  0x70   :  { %2708 = vmatpush3.bf16.msra.mxu1 %v3488_v36 }
  0x71   :  { %2741 = vmatprep.subr.bf16.mxu1 %v3254_v49 }
 0x106   :  { %v2299_v44 = vpop.f32.mrb[0].mxu1 }
 0x107   :  { %v3535_v45 = vadd.f32 %v2299_v44, %v112_v42  ;;  %v320_v47 = vpop.f32.mrb[1].mxu1 }
 0x108   :  { %v321_v44 = vadd.f32 %v320_v47, %v112_v42 }
 0x10a   :  { %v2302_v48 = vpop.f32.mrb[2].mxu1 }
 0x10b   :  { %v3537_v50 = vadd.f32 %v2302_v48, %v112_v42  ;;  %v330_v51 = vpop.f32.mrb[3].mxu1 }
 0x10c   :  { %v3539_v53 = vadd.f32 %v330_v51, %v112_v42 }
 0x10e   :  { %v2305_v56 = vpop.f32.mrb[4].mxu1 }
 0x10f   :  { %v3547_v59 = vadd.f32 %v2305_v56, %v112_v42  ;;  %v340_v60 = vpop.f32.mrb[5].mxu1 }
 0x110   :  { %v3552_v63 = vadd.f32 %v340_v60, %v112_v42 }
 0x112   :  { %v2308_v2 = vpop.f32.mrb[6].mxu1 }
 0x113   :  { %v3557_v6 = vadd.f32 %v2308_v2, %v112_v42  ;;  %v350_v7 = vpop.f32.mrb[7].mxu1 }
 0x114   :  { %v3560_v12 = vadd.f32 %v350_v7, %v112_v42 }
 0x11c   :  { %v481_v3 = vpop.f32.mrb[0].mxu0 }
 0x11d   :  { %v3045_v8 = vadd.f32 %v481_v3, %v3550_v61  ;;  %v483_v10 = vpop.f32.mrb[1].mxu0 }
 0x11e   :  { %v3046_v18 = vadd.f32 %v483_v10, %v3555_v5 }
 0x11f   :  { %v2101_v14 = vmul.f32 -1.442695, %v3045_v8 }
 0x120   :  { %v2102_v19 = vmul.f32 -1.442695, %v3046_v18 }
 0x121   :  { %3110 = vpow2.f32 %v2101_v14 }
 0x122   :  { %3112 = vpow2.f32 %v2102_v19 }
 0x126   :  { %v552_v21 = vpop.f32.mrb[8].mxu1 }
 0x127   :  { %v2343_v25 = vpop.f32.mrb[9].mxu1  ;;  %v570_v37 = vadd.f32 %v3566_v33, %v552_v21 }
 0x12b   :  { %v3111_v26 = vpop.eup %3110 }
 0x12c   :  { %v560_v29 = vadd.f32 1.0, %v3111_v26  ;;  %v3113_v30 = vpop.eup %3112 }
 0x12d   :  { %v567_v35 = vadd.f32 1.0, %v3113_v30 }
 0x12e   :  { %3114 = vrcp.f32 %v560_v29 }
 0x12f   :  { %3116 = vrcp.f32 %v567_v35 }
 0x138   :  { %v3115_v40 = vpop.eup %3114 }
 0x139   :  { %v571_v48 = vmul.f32 %v3115_v40, %v570_v37  ;;  %v3117_v56 = vpop.eup %3116 }
 0x13a   :  { %v574_v60 = vsub.f32 1.0, %v3117_v56  ;;  %v576_v7 = vmul.f32 %v3117_v56, %v3471_v28 }
 0x13b   :  { %v572_v51 = vadd.f32 %v571_v48, %v321_v44 }
 0x13d   :  { %3118 = vtanh.f32 %v572_v51 }
 0x147   :  { %v3119_v2 = vpop.eup %3118 }
 0x148   :  { %v575_v3 = vmul.f32 %v3119_v2, %v574_v60 }
 0x14a   :  { %v3570_v8 = vadd.f32 %v576_v7, %v575_v3 }
 0x14c   :  { %643 = vmatmul.mubr.f32.vlgmr.msra.gmra.mrb[2].mxu0 %v3570_v8  ;;  %2377 = vmatmul.mubr.f32.vlgmr.msra.gmra.mrb[10].mxu1 %v3570_v8 }
 0x14d   :  { %2712 = vmatpush1.bf16.msra.mxu0 %v3352_v16  ;;  %2743 = vmatpush3.bf16.msra.mxu1 %v3386_v41 }
 0x14e   :  { %2714 = vmatprep.subr.bf16.mxu0 %v3355_v17  ;;  %2744 = vmatprep.subr.bf16.mxu1 %v3254_v49 }
 0x14f   :  { %805 = vmatprep.mubr.f32.mxu0 %v3244_v1  ;;  %2411 = vmatprep.mubr.msk.f32.mxu1 %vm3255_vm1, %v3244_v1 }
 0x151   :  { %2716 = vmatpush1.bf16.msra.mxu0 %v3363_v23  ;;  %2746 = vmatpush3.bf16.msra.mxu1 %v3402_v52 }
 0x152   :  { %2718 = vmatprep.subr.bf16.mxu0 %v3366_v24  ;;  %2747 = vmatprep.subr.bf16.mxu1 %v3254_v49 }
 0x155   :  { %2720 = vmatpush1.bf16.msra.mxu0 %v3380_v32  ;;  %2749 = vmatpush3.bf16.msra.mxu1 %v3418_v62 }
 0x156   :  { %2722 = vmatprep.subr.bf16.mxu0 %v3383_v34  ;;  %2750 = vmatprep.subr.bf16.mxu1 %v3254_v49 }
 0x159   :  { %2724 = vmatpush1.bf16.msra.mxu0 %v3393_v43  ;;  %2752 = vmatpush3.bf16.msra.mxu1 %v3434_v9 }
 0x15a   :  { %2726 = vmatprep.subr.bf16.mxu0 %v3396_v46  ;;  %2753 = vmatprep.subr.bf16.mxu1 %v3254_v49 }
 0x15d   :  { %2728 = vmatpush1.bf16.msra.mxu0 %v3409_v54  ;;  %2755 = vmatpush3.bf16.msra.mxu1 %v3450_v20 }
 0x15e   :  { %2730 = vmatprep.subr.bf16.mxu0 %v3412_v57  ;;  %2756 = vmatprep.subr.bf16.mxu1 %v3254_v49 }
 0x161   :  { %2732 = vmatpush1.bf16.msra.mxu0 %v3425_v0  ;;  %2758 = vmatpush3.bf16.msra.mxu1 %v3464_v27 }
 0x162   :  { %2734 = vmatprep.subr.bf16.mxu0 %v3428_v4  ;;  %2759 = vmatprep.subr.bf16.mxu1 %v3254_v49 }
 0x165   :  { %2736 = vmatpush1.bf16.msra.mxu0 %v3441_v11  ;;  %2761 = vmatpush3.bf16.msra.mxu1 %v3479_v31 }
 0x166   :  { %2738 = vmatprep.subr.bf16.mxu0 %v3444_v15  ;;  %2762 = vmatprep.subr.bf16.mxu1 %v3254_v49 }
 0x169   :  { %2740 = vmatpush1.bf16.msra.mxu0 %v3457_v22  ;;  %2764 = vmatpush3.bf16.msra.mxu1 %v3488_v36 }
 0x16a   :  { %2766 = vmatprep.subr.bf16.mxu0 %v3350_v13  ;;  %2797 = vmatprep.subr.bf16.mxu1 %v3254_v49 }
 0x21f   :  { %v644_v28 = vpop.f32.mrb[2].mxu0  ;;  %v715_v42 = vpop.f32.mrb[10].mxu1 }
 0x220   :  { %v3047_v47 = vadd.f32 %v644_v28, %v3550_v61  ;;  %v646_v10 = vpop.f32.mrb[3].mxu0  ;;  %v2378_v14 = vpop.f32.mrb[11].mxu1  ;;  %v733_v35 = vadd.f32 %v3566_v33, %v715_v42 }
 0x221   :  { %v3048_v19 = vadd.f32 %v646_v10, %v3555_v5 }
 0x222   :  { %v2103_v18 = vmul.f32 -1.442695, %v3047_v47 }
 0x223   :  { %v2104_v21 = vmul.f32 -1.442695, %v3048_v19 }
 0x224   :  { %3120 = vpow2.f32 %v2103_v18 }
 0x225   :  { %3122 = vpow2.f32 %v2104_v21 }
 0x22e   :  { %v3121_v25 = vpop.eup %3120 }
 0x22f   :  { %v723_v26 = vadd.f32 1.0, %v3121_v25  ;;  %v3123_v29 = vpop.eup %3122 }
 0x230   :  { %v730_v30 = vadd.f32 1.0, %v3123_v29 }
 0x231   :  { %3124 = vrcp.f32 %v723_v26 }
 0x232   :  { %3126 = vrcp.f32 %v730_v30 }
 0x23b   :  { %v3125_v37 = vpop.eup %3124 }
 0x23c   :  { %v734_v40 = vmul.f32 %v3125_v37, %v733_v35  ;;  %v3127_v48 = vpop.eup %3126 }
 0x23d   :  { %v737_v51 = vsub.f32 1.0, %v3127_v48  ;;  %v739_v2 = vmul.f32 %v3127_v48, %v3570_v8 }
 0x23e   :  { %v735_v44 = vadd.f32 %v734_v40, %v3535_v45 }
 0x240   :  { %3128 = vtanh.f32 %v735_v44 }
 0x24a   :  { %v3129_v56 = vpop.eup %3128 }
 0x24b   :  { %v738_v60 = vmul.f32 %v3129_v56, %v737_v51 }
 0x24d   :  { %v3614_v3 = vadd.f32 %v739_v2, %v738_v60 }
 0x24f   :  { %806 = vmatmul.mubr.f32.vlgmr.msra.gmra.mrb[4].mxu0 %v3614_v3  ;;  %2412 = vmatmul.mubr.f32.vlgmr.msra.gmra.mrb[12].mxu1 %v3614_v3 }
 0x250   :  { %2768 = vmatpush1.bf16.msra.mxu0 %v3352_v16  ;;  %2799 = vmatpush3.bf16.msra.mxu1 %v3386_v41 }
 0x251   :  { %2770 = vmatprep.subr.bf16.mxu0 %v3355_v17  ;;  %2800 = vmatprep.subr.bf16.mxu1 %v3254_v49 }
 0x252   :  { %968 = vmatprep.mubr.f32.mxu0 %v3244_v1  ;;  %2446 = vmatprep.mubr.msk.f32.mxu1 %vm3255_vm1, %v3244_v1 }
 0x254   :  { %2772 = vmatpush1.bf16.msra.mxu0 %v3363_v23  ;;  %2802 = vmatpush3.bf16.msra.mxu1 %v3402_v52 }
 0x255   :  { %2774 = vmatprep.subr.bf16.mxu0 %v3366_v24  ;;  %2803 = vmatprep.subr.bf16.mxu1 %v3254_v49 }
 0x258   :  { %2776 = vmatpush1.bf16.msra.mxu0 %v3380_v32  ;;  %2805 = vmatpush3.bf16.msra.mxu1 %v3418_v62 }
 0x259   :  { %2778 = vmatprep.subr.bf16.mxu0 %v3383_v34  ;;  %2806 = vmatprep.subr.bf16.mxu1 %v3254_v49 }
 0x25c   :  { %2780 = vmatpush1.bf16.msra.mxu0 %v3393_v43  ;;  %2808 = vmatpush3.bf16.msra.mxu1 %v3434_v9 }
 0x25d   :  { %2782 = vmatprep.subr.bf16.mxu0 %v3396_v46  ;;  %2809 = vmatprep.subr.bf16.mxu1 %v3254_v49 }
 0x260   :  { %2784 = vmatpush1.bf16.msra.mxu0 %v3409_v54  ;;  %2811 = vmatpush3.bf16.msra.mxu1 %v3450_v20 }
 0x261   :  { %2786 = vmatprep.subr.bf16.mxu0 %v3412_v57  ;;  %2812 = vmatprep.subr.bf16.mxu1 %v3254_v49 }
 0x264   :  { %2788 = vmatpush1.bf16.msra.mxu0 %v3425_v0  ;;  %2814 = vmatpush3.bf16.msra.mxu1 %v3464_v27 }
 0x265   :  { %2790 = vmatprep.subr.bf16.mxu0 %v3428_v4  ;;  %2815 = vmatprep.subr.bf16.mxu1 %v3254_v49 }
 0x268   :  { %2792 = vmatpush1.bf16.msra.mxu0 %v3441_v11  ;;  %2817 = vmatpush3.bf16.msra.mxu1 %v3479_v31 }
 0x269   :  { %2794 = vmatprep.subr.bf16.mxu0 %v3444_v15  ;;  %2818 = vmatprep.subr.bf16.mxu1 %v3254_v49 }
 0x26c   :  { %2796 = vmatpush1.bf16.msra.mxu0 %v3457_v22  ;;  %2820 = vmatpush3.bf16.msra.mxu1 %v3488_v36 }
 0x26d   :  { %2822 = vmatprep.subr.bf16.mxu0 %v3350_v13  ;;  %2853 = vmatprep.subr.bf16.mxu1 %v3254_v49 }
 0x322   :  { %v807_v45 = vpop.f32.mrb[4].mxu0  ;;  %v878_v7 = vpop.f32.mrb[12].mxu1 }
 0x323   :  { %v3049_v28 = vadd.f32 %v807_v45, %v3550_v61  ;;  %v809_v42 = vpop.f32.mrb[5].mxu0  ;;  %v2413_v47 = vpop.f32.mrb[13].mxu1  ;;  %v896_v29 = vadd.f32 %v3566_v33, %v878_v7 }
 0x324   :  { %v3050_v14 = vadd.f32 %v809_v42, %v3555_v5 }
 0x325   :  { %v2105_v10 = vmul.f32 -1.442695, %v3049_v28 }
 0x326   :  { %v2106_v18 = vmul.f32 -1.442695, %v3050_v14 }
 0x327   :  { %3130 = vpow2.f32 %v2105_v10 }
 0x328   :  { %3132 = vpow2.f32 %v2106_v18 }
 0x331   :  { %v3131_v19 = vpop.eup %3130 }
 0x332   :  { %v886_v21 = vadd.f32 1.0, %v3131_v19  ;;  %v3133_v25 = vpop.eup %3132 }
 0x333   :  { %v893_v26 = vadd.f32 1.0, %v3133_v25 }
 0x334   :  { %3134 = vrcp.f32 %v886_v21 }
 0x335   :  { %3136 = vrcp.f32 %v893_v26 }
 0x33e   :  { %v3135_v30 = vpop.eup %3134 }
 0x33f   :  { %v897_v35 = vmul.f32 %v3135_v30, %v896_v29  ;;  %v3137_v40 = vpop.eup %3136 }
 0x340   :  { %v900_v44 = vsub.f32 1.0, %v3137_v40  ;;  %v902_v56 = vmul.f32 %v3137_v40, %v3614_v3 }
 0x341   :  { %v898_v37 = vadd.f32 %v897_v35, %v3539_v53 }
 0x343   :  { %3138 = vtanh.f32 %v898_v37 }
 0x34d   :  { %v3139_v48 = vpop.eup %3138 }
 0x34e   :  { %v901_v51 = vmul.f32 %v3139_v48, %v900_v44 }
 0x350   :  { %v3658_v60 = vadd.f32 %v902_v56, %v901_v51 }
 0x352   :  { %969 = vmatmul.mubr.f32.vlgmr.msra.gmra.mrb[6].mxu0 %v3658_v60  ;;  %2447 = vmatmul.mubr.f32.vlgmr.msra.gmra.mrb[14].mxu1 %v3658_v60 }
 0x353   :  { %2824 = vmatpush1.bf16.msra.mxu0 %v3352_v16  ;;  %2855 = vmatpush3.bf16.msra.mxu1 %v3386_v41 }
 0x354   :  { %2826 = vmatprep.subr.bf16.mxu0 %v3355_v17  ;;  %2856 = vmatprep.subr.bf16.mxu1 %v3254_v49 }
 0x355   :  { %1131 = vmatprep.mubr.f32.mxu0 %v3244_v1  ;;  %2481 = vmatprep.mubr.msk.f32.mxu1 %vm3255_vm1, %v3244_v1 }
 0x357   :  { %2828 = vmatpush1.bf16.msra.mxu0 %v3363_v23  ;;  %2858 = vmatpush3.bf16.msra.mxu1 %v3402_v52 }
 0x358   :  { %2830 = vmatprep.subr.bf16.mxu0 %v3366_v24  ;;  %2859 = vmatprep.subr.bf16.mxu1 %v3254_v49 }
 0x35b   :  { %2832 = vmatpush1.bf16.msra.mxu0 %v3380_v32  ;;  %2861 = vmatpush3.bf16.msra.mxu1 %v3418_v62 }
 0x35c   :  { %2834 = vmatprep.subr.bf16.mxu0 %v3383_v34  ;;  %2862 = vmatprep.subr.bf16.mxu1 %v3254_v49 }
 0x35f   :  { %2836 = vmatpush1.bf16.msra.mxu0 %v3393_v43  ;;  %2864 = vmatpush3.bf16.msra.mxu1 %v3434_v9 }
 0x360   :  { %2838 = vmatprep.subr.bf16.mxu0 %v3396_v46  ;;  %2865 = vmatprep.subr.bf16.mxu1 %v3254_v49 }
 0x363   :  { %2840 = vmatpush1.bf16.msra.mxu0 %v3409_v54  ;;  %2867 = vmatpush3.bf16.msra.mxu1 %v3450_v20 }
 0x364   :  { %2842 = vmatprep.subr.bf16.mxu0 %v3412_v57  ;;  %2868 = vmatprep.subr.bf16.mxu1 %v3254_v49 }
 0x367   :  { %2844 = vmatpush1.bf16.msra.mxu0 %v3425_v0  ;;  %2870 = vmatpush3.bf16.msra.mxu1 %v3464_v27 }
 0x368   :  { %2846 = vmatprep.subr.bf16.mxu0 %v3428_v4  ;;  %2871 = vmatprep.subr.bf16.mxu1 %v3254_v49 }
 0x36b   :  { %2848 = vmatpush1.bf16.msra.mxu0 %v3441_v11  ;;  %2873 = vmatpush3.bf16.msra.mxu1 %v3479_v31 }
 0x36c   :  { %2850 = vmatprep.subr.bf16.mxu0 %v3444_v15  ;;  %2874 = vmatprep.subr.bf16.mxu1 %v3254_v49 }
 0x36f   :  { %2852 = vmatpush1.bf16.msra.mxu0 %v3457_v22  ;;  %2876 = vmatpush3.bf16.msra.mxu1 %v3488_v36 }
 0x370   :  { %2878 = vmatprep.subr.bf16.mxu0 %v3350_v13  ;;  %2909 = vmatprep.subr.bf16.mxu1 %v3254_v49 }
 0x425   :  { %v970_v53 = vpop.f32.mrb[6].mxu0  ;;  %v1041_v2 = vpop.f32.mrb[14].mxu1 }
 0x426   :  { %v3051_v45 = vadd.f32 %v970_v53, %v3550_v61  ;;  %v972_v7 = vpop.f32.mrb[7].mxu0  ;;  %v2448_v28 = vpop.f32.mrb[15].mxu1  ;;  %v1059_v25 = vadd.f32 %v3566_v33, %v1041_v2 }
 0x427   :  { %v3052_v47 = vadd.f32 %v972_v7, %v3555_v5 }
 0x428   :  { %v2107_v42 = vmul.f32 -1.442695, %v3051_v45 }
 0x429   :  { %v2108_v10 = vmul.f32 -1.442695, %v3052_v47 }
 0x42a   :  { %3140 = vpow2.f32 %v2107_v42 }
 0x42b   :  { %3142 = vpow2.f32 %v2108_v10 }
 0x434   :  { %v3141_v14 = vpop.eup %3140 }
 0x435   :  { %v1049_v18 = vadd.f32 1.0, %v3141_v14  ;;  %v3143_v19 = vpop.eup %3142 }
 0x436   :  { %v1056_v21 = vadd.f32 1.0, %v3143_v19 }
 0x437   :  { %3144 = vrcp.f32 %v1049_v18 }
 0x438   :  { %3146 = vrcp.f32 %v1056_v21 }
 0x441   :  { %v3145_v26 = vpop.eup %3144 }
 0x442   :  { %v1060_v29 = vmul.f32 %v3145_v26, %v1059_v25  ;;  %v3147_v35 = vpop.eup %3146 }
 0x443   :  { %v1063_v37 = vsub.f32 1.0, %v3147_v35  ;;  %v1065_v48 = vmul.f32 %v3147_v35, %v3658_v60 }
 0x444   :  { %v1061_v30 = vadd.f32 %v1060_v29, %v3537_v50 }
 0x446   :  { %3148 = vtanh.f32 %v1061_v30 }
 0x450   :  { %v3149_v40 = vpop.eup %3148 }
 0x451   :  { %v1064_v44 = vmul.f32 %v3149_v40, %v1063_v37 }
 0x453   :  { %v3702_v51 = vadd.f32 %v1065_v48, %v1064_v44 }
 0x455   :  { %1132 = vmatmul.mubr.f32.vlgmr.msra.gmra.mrb[8].mxu0 %v3702_v51  ;;  %2482 = vmatmul.mubr.f32.vlgmr.msra.gmra.mrb[16].mxu1 %v3702_v51 }
 0x456   :  { %2880 = vmatpush1.bf16.msra.mxu0 %v3352_v16  ;;  %2911 = vmatpush3.bf16.msra.mxu1 %v3386_v41 }
 0x457   :  { %2882 = vmatprep.subr.bf16.mxu0 %v3355_v17  ;;  %2912 = vmatprep.subr.bf16.mxu1 %v3254_v49 }
 0x458   :  { %1294 = vmatprep.mubr.f32.mxu0 %v3244_v1  ;;  %2516 = vmatprep.mubr.msk.f32.mxu1 %vm3255_vm1, %v3244_v1 }
 0x45a   :  { %2884 = vmatpush1.bf16.msra.mxu0 %v3363_v23  ;;  %2914 = vmatpush3.bf16.msra.mxu1 %v3402_v52 }
 0x45b   :  { %2886 = vmatprep.subr.bf16.mxu0 %v3366_v24  ;;  %2915 = vmatprep.subr.bf16.mxu1 %v3254_v49 }
 0x45e   :  { %2888 = vmatpush1.bf16.msra.mxu0 %v3380_v32  ;;  %2917 = vmatpush3.bf16.msra.mxu1 %v3418_v62 }
 0x45f   :  { %2890 = vmatprep.subr.bf16.mxu0 %v3383_v34  ;;  %2918 = vmatprep.subr.bf16.mxu1 %v3254_v49 }
 0x462   :  { %2892 = vmatpush1.bf16.msra.mxu0 %v3393_v43  ;;  %2920 = vmatpush3.bf16.msra.mxu1 %v3434_v9 }
 0x463   :  { %2894 = vmatprep.subr.bf16.mxu0 %v3396_v46  ;;  %2921 = vmatprep.subr.bf16.mxu1 %v3254_v49 }
 0x466   :  { %2896 = vmatpush1.bf16.msra.mxu0 %v3409_v54  ;;  %2923 = vmatpush3.bf16.msra.mxu1 %v3450_v20 }
 0x467   :  { %2898 = vmatprep.subr.bf16.mxu0 %v3412_v57  ;;  %2924 = vmatprep.subr.bf16.mxu1 %v3254_v49 }
 0x46a   :  { %2900 = vmatpush1.bf16.msra.mxu0 %v3425_v0  ;;  %2926 = vmatpush3.bf16.msra.mxu1 %v3464_v27 }
 0x46b   :  { %2902 = vmatprep.subr.bf16.mxu0 %v3428_v4  ;;  %2927 = vmatprep.subr.bf16.mxu1 %v3254_v49 }
 0x46e   :  { %2904 = vmatpush1.bf16.msra.mxu0 %v3441_v11  ;;  %2929 = vmatpush3.bf16.msra.mxu1 %v3479_v31 }
 0x46f   :  { %2906 = vmatprep.subr.bf16.mxu0 %v3444_v15  ;;  %2930 = vmatprep.subr.bf16.mxu1 %v3254_v49 }
 0x472   :  { %2908 = vmatpush1.bf16.msra.mxu0 %v3457_v22  ;;  %2932 = vmatpush3.bf16.msra.mxu1 %v3488_v36 }
 0x473   :  { %2934 = vmatprep.subr.bf16.mxu0 %v3350_v13  ;;  %2965 = vmatprep.subr.bf16.mxu1 %v3254_v49 }
 0x528   :  { %v1133_v50 = vpop.f32.mrb[8].mxu0  ;;  %v1204_v56 = vpop.f32.mrb[16].mxu1 }
 0x529   :  { %v3053_v53 = vadd.f32 %v1133_v50, %v3550_v61  ;;  %v1135_v2 = vpop.f32.mrb[9].mxu0  ;;  %v2483_v45 = vpop.f32.mrb[17].mxu1  ;;  %v1222_v19 = vadd.f32 %v3566_v33, %v1204_v56 }
 0x52a   :  { %v3054_v28 = vadd.f32 %v1135_v2, %v3555_v5 }
 0x52b   :  { %v2109_v7 = vmul.f32 -1.442695, %v3053_v53 }
 0x52c   :  { %v2110_v42 = vmul.f32 -1.442695, %v3054_v28 }
 0x52d   :  { %3150 = vpow2.f32 %v2109_v7 }
 0x52e   :  { %3152 = vpow2.f32 %v2110_v42 }
 0x537   :  { %v3151_v47 = vpop.eup %3150 }
 0x538   :  { %v1212_v10 = vadd.f32 1.0, %v3151_v47  ;;  %v3153_v14 = vpop.eup %3152 }
 0x539   :  { %v1219_v18 = vadd.f32 1.0, %v3153_v14 }
 0x53a   :  { %3154 = vrcp.f32 %v1212_v10 }
 0x53b   :  { %3156 = vrcp.f32 %v1219_v18 }
 0x544   :  { %v3155_v21 = vpop.eup %3154 }
 0x545   :  { %v1223_v25 = vmul.f32 %v3155_v21, %v1222_v19  ;;  %v3157_v29 = vpop.eup %3156 }
 0x546   :  { %v1226_v30 = vsub.f32 1.0, %v3157_v29  ;;  %v1228_v40 = vmul.f32 %v3157_v29, %v3702_v51 }
 0x547   :  { %v1224_v26 = vadd.f32 %v1223_v25, %v3552_v63 }
 0x549   :  { %3158 = vtanh.f32 %v1224_v26 }
 0x553   :  { %v3159_v35 = vpop.eup %3158 }
 0x554   :  { %v1227_v37 = vmul.f32 %v3159_v35, %v1226_v30 }
 0x556   :  { %v3746_v44 = vadd.f32 %v1228_v40, %v1227_v37 }
 0x558   :  { %1295 = vmatmul.mubr.f32.vlgmr.msra.gmra.mrb[10].mxu0 %v3746_v44  ;;  %2517 = vmatmul.mubr.f32.vlgmr.msra.gmra.mrb[18].mxu1 %v3746_v44 }
 0x559   :  { %2936 = vmatpush1.bf16.msra.mxu0 %v3352_v16  ;;  %2967 = vmatpush3.bf16.msra.mxu1 %v3386_v41 }
 0x55a   :  { %2938 = vmatprep.subr.bf16.mxu0 %v3355_v17  ;;  %2968 = vmatprep.subr.bf16.mxu1 %v3254_v49 }
 0x55b   :  { %1457 = vmatprep.mubr.f32.mxu0 %v3244_v1  ;;  %2551 = vmatprep.mubr.msk.f32.mxu1 %vm3255_vm1, %v3244_v1 }
 0x55d   :  { %2940 = vmatpush1.bf16.msra.mxu0 %v3363_v23  ;;  %2970 = vmatpush3.bf16.msra.mxu1 %v3402_v52 }
 0x55e   :  { %2942 = vmatprep.subr.bf16.mxu0 %v3366_v24  ;;  %2971 = vmatprep.subr.bf16.mxu1 %v3254_v49 }
 0x561   :  { %2944 = vmatpush1.bf16.msra.mxu0 %v3380_v32  ;;  %2973 = vmatpush3.bf16.msra.mxu1 %v3418_v62 }
 0x562   :  { %2946 = vmatprep.subr.bf16.mxu0 %v3383_v34  ;;  %2974 = vmatprep.subr.bf16.mxu1 %v3254_v49 }
 0x565   :  { %2948 = vmatpush1.bf16.msra.mxu0 %v3393_v43  ;;  %2976 = vmatpush3.bf16.msra.mxu1 %v3434_v9 }
 0x566   :  { %2950 = vmatprep.subr.bf16.mxu0 %v3396_v46  ;;  %2977 = vmatprep.subr.bf16.mxu1 %v3254_v49 }
 0x569   :  { %2952 = vmatpush1.bf16.msra.mxu0 %v3409_v54  ;;  %2979 = vmatpush3.bf16.msra.mxu1 %v3450_v20 }
 0x56a   :  { %2954 = vmatprep.subr.bf16.mxu0 %v3412_v57  ;;  %2980 = vmatprep.subr.bf16.mxu1 %v3254_v49 }
 0x56d   :  { %2956 = vmatpush1.bf16.msra.mxu0 %v3425_v0  ;;  %2982 = vmatpush3.bf16.msra.mxu1 %v3464_v27 }
 0x56e   :  { %2958 = vmatprep.subr.bf16.mxu0 %v3428_v4  ;;  %2983 = vmatprep.subr.bf16.mxu1 %v3254_v49 }
 0x571   :  { %2960 = vmatpush1.bf16.msra.mxu0 %v3441_v11  ;;  %2985 = vmatpush3.bf16.msra.mxu1 %v3479_v31 }
 0x572   :  { %2962 = vmatprep.subr.bf16.mxu0 %v3444_v15  ;;  %2986 = vmatprep.subr.bf16.mxu1 %v3254_v49 }
 0x575   :  { %2964 = vmatpush1.bf16.msra.mxu0 %v3457_v22  ;;  %2988 = vmatpush3.bf16.msra.mxu1 %v3488_v36 }
 0x576   :  { %2990 = vmatprep.subr.bf16.mxu0 %v3350_v13  ;;  %3021 = vmatprep.subr.bf16.mxu1 %v3254_v49 }
 0x62b   :  { %v1296_v63 = vpop.f32.mrb[10].mxu0  ;;  %v1367_v48 = vpop.f32.mrb[18].mxu1 }
 0x62c   :  { %v3055_v50 = vadd.f32 %v1296_v63, %v3550_v61  ;;  %v1298_v56 = vpop.f32.mrb[11].mxu0  ;;  %v2518_v53 = vpop.f32.mrb[19].mxu1  ;;  %v1385_v13 = vadd.f32 %v3566_v33, %v1367_v48 }
 0x62d   :  { %v3056_v45 = vadd.f32 %v1298_v56, %v3555_v5 }
 0x62e   :  { %v2111_v2 = vmul.f32 -1.442695, %v3055_v50 }
 0x62f   :  { %v2112_v7 = vmul.f32 -1.442695, %v3056_v45 }
 0x630   :  { %3160 = vpow2.f32 %v2111_v2 }
 0x631   :  { %3162 = vpow2.f32 %v2112_v7 }
 0x63a   :  { %v3161_v28 = vpop.eup %3160 }
 0x63b   :  { %v1375_v42 = vadd.f32 1.0, %v3161_v28  ;;  %v3163_v47 = vpop.eup %3162 }
 0x63c   :  { %v1382_v10 = vadd.f32 1.0, %v3163_v47 }
 0x63d   :  { %3164 = vrcp.f32 %v1375_v42 }
 0x63e   :  { %3166 = vrcp.f32 %v1382_v10 }
 0x647   :  { %v3165_v14 = vpop.eup %3164 }
 0x648   :  { %v1386_v18 = vmul.f32 %v3165_v14, %v1385_v13  ;;  %v3167_v21 = vpop.eup %3166 }
 0x649   :  { %v1389_v25 = vsub.f32 1.0, %v3167_v21  ;;  %v1391_v30 = vmul.f32 %v3167_v21, %v3746_v44 }
 0x64a   :  { %v1387_v19 = vadd.f32 %v1386_v18, %v3547_v59 }
 0x64c   :  { %3168 = vtanh.f32 %v1387_v19 }
 0x656   :  { %v3169_v26 = vpop.eup %3168 }
 0x657   :  { %v1390_v29 = vmul.f32 %v3169_v26, %v1389_v25 }
 0x659   :  { %v3790_v35 = vadd.f32 %v1391_v30, %v1390_v29 }
 0x65b   :  { %1458 = vmatmul.mubr.f32.vlgmr.msra.gmra.mrb[12].mxu0 %v3790_v35  ;;  %2552 = vmatmul.mubr.f32.vlgmr.msra.gmra.mrb[20].mxu1 %v3790_v35  ;;  %v3095_v37 = vpack.i.bf16 %v3790_v35, %v3614_v3 }
 0x65c   :  { %2992 = vmatpush1.bf16.msra.mxu0 %v3352_v16  ;;  %3023 = vmatpush3.bf16.msra.mxu1 %v3386_v41 }
 0x65d   :  { %3096 = vrot.lane.b32.xlu0 %v3095_v37, %s3256_s5  ;;  %2994 = vmatprep.subr.bf16.mxu0 %v3355_v17 }
 0x65e   :  { %3024 = vmatprep.subr.bf16.mxu1 %v3254_v49  ;;  %1620 = vmatprep.mubr.f32.mxu0 %v3244_v1 }
 0x65f   :  { %2586 = vmatprep.mubr.msk.f32.mxu1 %vm3255_vm1, %v3244_v1 }
 0x660   :  { %2996 = vmatpush1.bf16.msra.mxu0 %v3363_v23  ;;  %3026 = vmatpush3.bf16.msra.mxu1 %v3402_v52 }
 0x661   :  { %2998 = vmatprep.subr.bf16.mxu0 %v3366_v24  ;;  %3027 = vmatprep.subr.bf16.mxu1 %v3254_v49 }
 0x664   :  { %3000 = vmatpush1.bf16.msra.mxu0 %v3380_v32  ;;  %3029 = vmatpush3.bf16.msra.mxu1 %v3418_v62 }
 0x665   :  { %3002 = vmatprep.subr.bf16.mxu0 %v3383_v34  ;;  %3030 = vmatprep.subr.bf16.mxu1 %v3254_v49 }
 0x668   :  { %3004 = vmatpush1.bf16.msra.mxu0 %v3393_v43  ;;  %3032 = vmatpush3.bf16.msra.mxu1 %v3434_v9 }
 0x669   :  { %3006 = vmatprep.subr.bf16.mxu0 %v3396_v46  ;;  %3033 = vmatprep.subr.bf16.mxu1 %v3254_v49 }
 0x66c   :  { %3008 = vmatpush1.bf16.msra.mxu0 %v3409_v54  ;;  %3035 = vmatpush3.bf16.msra.mxu1 %v3450_v20 }
 0x66d   :  { %3010 = vmatprep.subr.bf16.mxu0 %v3412_v57  ;;  %3036 = vmatprep.subr.bf16.mxu1 %v3254_v49 }
 0x670   :  { %3012 = vmatpush1.bf16.msra.mxu0 %v3425_v0  ;;  %3038 = vmatpush3.bf16.msra.mxu1 %v3464_v27 }
 0x671   :  { %3014 = vmatprep.subr.bf16.mxu0 %v3428_v4  ;;  %3039 = vmatprep.subr.bf16.mxu1 %v3254_v49 }
 0x674   :  { %3016 = vmatpush1.bf16.msra.mxu0 %v3441_v11  ;;  %3041 = vmatpush3.bf16.msra.mxu1 %v3479_v31 }
 0x675   :  { %3018 = vmatprep.subr.bf16.mxu0 %v3444_v15  ;;  %3042 = vmatprep.subr.bf16.mxu1 %v3254_v49 }
 0x678   :  { %3020 = vmatpush1.bf16.msra.mxu0 %v3457_v22  ;;  %3044 = vmatpush3.bf16.msra.mxu1 %v3488_v36 }
 0x6cf   :  { %v3097_v18 = vpop.permute.xlu0 %3096 }
 0x6d0   :  { %v3099_v21 = vunpack.i.h.bf16 %v3097_v18 }
 0x6d2   :  { %v1749_v29 = vsel %vm1743_vm2, %v3746_v44, %v3099_v21 }
 0x72e   :  { %v1459_v1 = vpop.f32.mrb[12].mxu0  ;;  %v1530_v16 = vpop.f32.mrb[20].mxu1 }
 0x72f   :  { %v3057_v17 = vadd.f32 %v1459_v1, %v3550_v61  ;;  %v1461_v23 = vpop.f32.mrb[13].mxu0  ;;  %v2553_v24 = vpop.f32.mrb[21].mxu1  ;;  %v1548_v54 = vadd.f32 %v3566_v33, %v1530_v16 }
 0x730   :  { %v3058_v34 = vadd.f32 %v1461_v23, %v3555_v5 }
 0x731   :  { %v2113_v32 = vmul.f32 -1.442695, %v3057_v17 }
 0x732   :  { %v2114_v41 = vmul.f32 -1.442695, %v3058_v34 }
 0x733   :  { %3170 = vpow2.f32 %v2113_v32 }
 0x734   :  { %3172 = vpow2.f32 %v2114_v41 }
 0x73d   :  { %v3171_v43 = vpop.eup %3170 }
 0x73e   :  { %v1538_v46 = vadd.f32 1.0, %v3171_v43  ;;  %v3173_v49 = vpop.eup %3172 }
 0x73f   :  { %v1545_v52 = vadd.f32 1.0, %v3173_v49 }
 0x740   :  { %3174 = vrcp.f32 %v1538_v46 }
 0x741   :  { %3176 = vrcp.f32 %v1545_v52 }
 0x74a   :  { %v3175_v57 = vpop.eup %3174 }
 0x74b   :  { %v1549_v62 = vmul.f32 %v3175_v57, %v1548_v54  ;;  %v3177_v4 = vpop.eup %3176 }
 0x74c   :  { %v1552_v9 = vsub.f32 1.0, %v3177_v4  ;;  %v1554_v20 = vmul.f32 %v3177_v4, %v3790_v35 }
 0x74d   :  { %v1550_v0 = vadd.f32 %v1549_v62, %v3560_v12 }
 0x74f   :  { %3178 = vtanh.f32 %v1550_v0 }
 0x759   :  { %v3179_v11 = vpop.eup %3178 }
 0x75a   :  { %v1553_v15 = vmul.f32 %v3179_v11, %v1552_v9 }
 0x75c   :  { %v1555_v22 = vadd.f32 %v1554_v20, %v1553_v15 }
 0x75e   :  { %1621 = vmatmul.mubr.f32.vlgmr.msra.gmra.mrb[14].mxu0 %v1555_v22  ;;  %2587 = vmatmul.mubr.f32.vlgmr.msra.gmra.mrb[22].mxu1 %v1555_v22  ;;  %v3100_v27 = vpack.i.bf16 %v1555_v22, %v3658_v60 }
 0x760   :  { %3101 = vrot.lane.b32.xlu0 %v3100_v27, %s3246_s11  ;;  %s3257_s11 = smov 96  }
 0x7d2   :  { %v3102_v19 = vpop.permute.xlu0 %3101 }
 0x7d3   :  { %v3104_v25 = vunpack.i.h.bf16 %v3102_v19  ;;  %v3103_v26 = vunpack.i.l.bf16 %v3102_v19 }
 0x7d5   :  { %v1750_v1 = vsel %vm1745_vm3, %v1749_v29, %v3104_v25 }
 0x831   :  { %v1622_v31 = vpop.f32.mrb[14].mxu0  ;;  %v1693_v36 = vpop.f32.mrb[22].mxu1 }
 0x832   :  { %v3059_v59 = vadd.f32 %v1622_v31, %v3550_v61  ;;  %v1624_v3 = vpop.f32.mrb[15].mxu0  ;;  %v2588_v12 = vpop.f32.mrb[23].mxu1  ;;  %v1711_v60 = vadd.f32 %v3566_v33, %v1693_v36  ;;  %v3098_v33 = vunpack.i.l.bf16 %v3097_v18 }
 0x833   :  { %v3060_v63 = vadd.f32 %v1624_v3, %v3555_v5 }
 0x834   :  { %v2115_v40 = vmul.f32 -1.442695, %v3059_v59  ;;  %v1744_v30 = vsel %vm1743_vm2, %v3570_v8, %v3098_v33 }
 0x835   :  { %v2116_v48 = vmul.f32 -1.442695, %v3060_v63 }
 0x836   :  { %3180 = vpow2.f32 %v2115_v40 }
 0x837   :  { %3182 = vpow2.f32 %v2116_v48 }
 0x840   :  { %v3181_v50 = vpop.eup %3180 }
 0x841   :  { %v1701_v56 = vadd.f32 1.0, %v3181_v50  ;;  %v3183_v53 = vpop.eup %3182 }
 0x842   :  { %v1708_v2 = vadd.f32 1.0, %v3183_v53 }
 0x843   :  { %3184 = vrcp.f32 %v1701_v56 }
 0x844   :  { %3186 = vrcp.f32 %v1708_v2 }
 0x84d   :  { %v3185_v45 = vpop.eup %3184 }
 0x84e   :  { %v1712_v7 = vmul.f32 %v3185_v45, %v1711_v60  ;;  %v3187_v28 = vpop.eup %3186 }
 0x84f   :  { %v1715_v42 = vsub.f32 1.0, %v3187_v28  ;;  %v1717_v10 = vmul.f32 %v3187_v28, %v1555_v22 }
 0x850   :  { %v1713_v61 = vadd.f32 %v1712_v7, %v3557_v6 }
 0x852   :  { %3188 = vtanh.f32 %v1713_v61 }
 0x85c   :  { %v3189_v47 = vpop.eup %3188 }
 0x85d   :  { %v1716_v5 = vmul.f32 %v3189_v47, %v1715_v42 }
 0x85f   :  { %v1718_v13 = vadd.f32 %v1717_v10, %v1716_v5 }
 0x861   :  { %v3105_v14 = vpack.i.bf16 %v1718_v13, %v3702_v51  ;;  %v1746_v51 = vsel %vm1745_vm3, %v1744_v30, %v3103_v26 }
 0x863   :  { %3106 = vrot.lane.b32.xlu1 %v3105_v14, %s3257_s11 }
 0x8d5   :  { %v3107_v6 = vpop.permute.xlu1 %3106 }
 0x8d6   :  { %v3109_v35 = vunpack.i.h.bf16 %v3107_v6  ;;  %v3108_v37 = vunpack.i.l.bf16 %v3107_v6 }
 0x8d8   :  { %v1751_v16 = vsel %vm1747_vm4, %v1750_v1, %v3109_v35  ;;  %v3843_v17 = vsel %vm1747_vm4, %v1746_v51, %v3108_v37 }
 0x8d9   :  { %3238 = dma.done.wait [#allocation3], 10240 }
 0x8da   :  { %3239 = vsyncadd [#allocation3], 4294957056  ;;  %v3845_v23 = vpack.c.bf16 %v1751_v16, %v1751_v16  ;;  %v1759_v24 = vld [vmem:[#allocation2 + $0x8] sm:$0xff]  ;;  %v1758_v32 = vld [vmem:[#allocation2] sm:$0xff]  ;;  %vm2069_vm5 = vcmask 7168  }
 0x8db   :  { %v1761_v44 = vld [vmem:[#allocation2 + $0x18] sm:$0xff]  ;;  %1865 = vmatprep.subr.bf16.mxu0 %v1759_v24  ;;  %v1764_v8 = vld [vmem:[#allocation2 + $0x30] sm:$0xff]  ;;  %v1766_v41 = vld [vmem:[#allocation2 + $0x40] sm:$0xff] }
 0x8dc   :  { %1897 = vmatprep.mubr.bf16.mxu0 %v3845_v23  ;;  %1938 = vmatprep.mubr.bf16.mxu1 %v3845_v23  ;;  %v1760_v34 = vld [vmem:[#allocation2 + $0x10] sm:$0xff]  ;;  %v1763_v43 = vld [vmem:[#allocation2 + $0x28] sm:$0xff]  ;;  %v1765_v46 = vld [vmem:[#allocation2 + $0x38] sm:$0xff] }
 0x8dd   :  { %1906 = vmatprep.subr.bf16.mxu1 %v1761_v44  ;;  %1866 = vmatpush1.bf16.msra.mxu0 %v1758_v32  ;;  %v1769_v49 = vld [vmem:[#allocation2 + $0x58] sm:$0xff]  ;;  %v1771_v52 = vld [vmem:[#allocation2 + $0x68] sm:$0xff]  ;;  %v1768_v54 = vld [vmem:[#allocation2 + $0x50] sm:$0xff] }
 0x8de   :  { %1907 = vmatpush1.bf16.msra.mxu1 %v1760_v34  ;;  %1867 = vmatprep.subr.bf16.mxu0 %v1764_v8  ;;  %v1770_v57 = vld [vmem:[#allocation2 + $0x60] sm:$0xff]  ;;  %v1776_v0 = vld [vmem:[#allocation2 + $0x90] sm:$0xff]  ;;  %v1773_v4 = vld [vmem:[#allocation2 + $0x78] sm:$0xff] }
 0x8df   :  { %1908 = vmatprep.subr.bf16.mxu1 %v1766_v41  ;;  %v1774_v62 = vld [vmem:[#allocation2 + $0x80] sm:$0xff]  ;;  %v1775_v9 = vld [vmem:[#allocation2 + $0x88] sm:$0xff]  ;;  %v1781_v15 = vld [vmem:[#allocation2 + $0xb8] sm:$0xff] }
 0x8e0   :  { %v1779_v11 = vld [vmem:[#allocation2 + $0xa8] sm:$0xff]  ;;  %v1778_v20 = vld [vmem:[#allocation2 + $0xa0] sm:$0xff]  ;;  %v1780_v22 = vld [vmem:[#allocation2 + $0xb0] sm:$0xff] }
 0x8e1   :  { %1868 = vmatpush1.bf16.msra.mxu0 %v1763_v43  ;;  %v1784_v27 = vld [vmem:[#allocation2 + $0xd0] sm:$0xff]  ;;  %v1786_v31 = vld [vmem:[#allocation2 + $0xe0] sm:$0xff]  ;;  %v1783_v36 = vld [vmem:[#allocation2 + $0xc8] sm:$0xff] }
 0x8e2   :  { %1909 = vmatpush1.bf16.msra.mxu1 %v1765_v46  ;;  %1869 = vmatprep.subr.bf16.mxu0 %v1769_v49  ;;  %v1785_v59 = vld [vmem:[#allocation2 + $0xd8] sm:$0xff]  ;;  %v1791_v12 = vld [vmem:[#allocation2 + $0x108] sm:$0xff]  ;;  %v1788_v40 = vld [vmem:[#allocation2 + $0xf0] sm:$0xff]  ;;  %v1756_v46 = vpack.c.bf16 %v3843_v17, %v3843_v17 }
 0x8e3   :  { %1910 = vmatprep.subr.bf16.mxu1 %v1771_v52  ;;  %v1789_v3 = vld [vmem:[#allocation2 + $0xf8] sm:$0xff]  ;;  %v1790_v63 = vld [vmem:[#allocation2 + $0x100] sm:$0xff]  ;;  %v1796_v50 = vld [vmem:[#allocation2 + $0x130] sm:$0xff] }
 0x8e4   :  { %v1794_v48 = vld [vmem:[#allocation2 + $0x120] sm:$0xff]  ;;  %v1793_v56 = vld [vmem:[#allocation2 + $0x118] sm:$0xff]  ;;  %v1795_v53 = vld [vmem:[#allocation2 + $0x128] sm:$0xff] }
 0x8e5   :  { %1870 = vmatpush1.bf16.msra.mxu0 %v1768_v54  ;;  %v1799_v2 = vld [vmem:[#allocation2 + $0x148] sm:$0xff]  ;;  %v1801_v60 = vld [vmem:[#allocation2 + $0x158] sm:$0xff]  ;;  %v1798_v45 = vld [vmem:[#allocation2 + $0x140] sm:$0xff] }
 0x8e6   :  { %1911 = vmatpush1.bf16.msra.mxu1 %v1770_v57  ;;  %1871 = vmatprep.subr.bf16.mxu0 %v1774_v62  ;;  %v1800_v7 = vld [vmem:[#allocation2 + $0x150] sm:$0xff]  ;;  %v1806_v28 = vld [vmem:[#allocation2 + $0x180] sm:$0xff]  ;;  %v1803_v42 = vld [vmem:[#allocation2 + $0x168] sm:$0xff] }
 0x8e7   :  { %1912 = vmatprep.subr.bf16.mxu1 %v1776_v0  ;;  %v1804_v61 = vld [vmem:[#allocation2 + $0x170] sm:$0xff]  ;;  %v1805_v47 = vld [vmem:[#allocation2 + $0x178] sm:$0xff]  ;;  %v1811_v10 = vld [vmem:[#allocation2 + $0x1a8] sm:$0xff] }
 0x8e8   :  { %v1809_v5 = vld [vmem:[#allocation2 + $0x198] sm:$0xff]  ;;  %v1808_v13 = vld [vmem:[#allocation2 + $0x190] sm:$0xff]  ;;  %v1810_v14 = vld [vmem:[#allocation2 + $0x1a0] sm:$0xff] }
 0x8e9   :  { %1872 = vmatpush1.bf16.msra.mxu0 %v1773_v4  ;;  %v1814_v18 = vld [vmem:[#allocation2 + $0x1c0] sm:$0xff]  ;;  %v1816_v19 = vld [vmem:[#allocation2 + $0x1d0] sm:$0xff]  ;;  %v1813_v21 = vld [vmem:[#allocation2 + $0x1b8] sm:$0xff] }
 0x8ea   :  { %1913 = vmatpush1.bf16.msra.mxu1 %v1775_v9  ;;  %1873 = vmatprep.subr.bf16.mxu0 %v1779_v11  ;;  %v1815_v33 = vld [vmem:[#allocation2 + $0x1c8] sm:$0xff]  ;;  %v1821_v26 = vld [vmem:[#allocation2 + $0x1f8] sm:$0xff]  ;;  %v1818_v6 = vld [vmem:[#allocation2 + $0x1e0] sm:$0xff] }
 0x8eb   :  { %1914 = vmatprep.subr.bf16.mxu1 %v1781_v15  ;;  %v1819_v25 = vld [vmem:[#allocation2 + $0x1e8] sm:$0xff]  ;;  %v1820_v29 = vld [vmem:[#allocation2 + $0x1f0] sm:$0xff]  ;;  %v1826_v35 = vld [vmem:[#allocation2 + $0x220] sm:$0xff] }
 0x8ec   :  { %v1824_v30 = vld [vmem:[#allocation2 + $0x210] sm:$0xff]  ;;  %v1823_v37 = vld [vmem:[#allocation2 + $0x208] sm:$0xff]  ;;  %v1825_v1 = vld [vmem:[#allocation2 + $0x218] sm:$0xff] }
 0x8ed   :  { %1874 = vmatpush1.bf16.msra.mxu0 %v1778_v20  ;;  %v1829_v51 = vld [vmem:[#allocation2 + $0x238] sm:$0xff]  ;;  %v1831_v16 = vld [vmem:[#allocation2 + $0x248] sm:$0xff]  ;;  %v1828_v24 = vld [vmem:[#allocation2 + $0x230] sm:$0xff] }
 0x8ee   :  { %1915 = vmatpush1.bf16.msra.mxu1 %v1780_v22  ;;  %1875 = vmatprep.subr.bf16.mxu0 %v1784_v27  ;;  %v1830_v32 = vld [vmem:[#allocation2 + $0x240] sm:$0xff]  ;;  %v1836_v8 = vld [vmem:[#allocation2 + $0x270] sm:$0xff]  ;;  %v1833_v34 = vld [vmem:[#allocation2 + $0x258] sm:$0xff] }
 0x8ef   :  { %1916 = vmatprep.subr.bf16.mxu1 %v1786_v31  ;;  %v1834_v44 = vld [vmem:[#allocation2 + $0x260] sm:$0xff]  ;;  %v1835_v41 = vld [vmem:[#allocation2 + $0x268] sm:$0xff]  ;;  %v1812_v57 = vld [vmem:[#allocation2 + $0x1b0] sm:$0xff] }
 0x8f0   :  { %v1802_v43 = vld [vmem:[#allocation2 + $0x160] sm:$0xff]  ;;  %v1807_v52 = vld [vmem:[#allocation2 + $0x188] sm:$0xff]  ;;  %v1772_v62 = vld [vmem:[#allocation2 + $0x70] sm:$0xff] }
 0x8f1   :  { %1876 = vmatpush1.bf16.msra.mxu0 %v1783_v36  ;;  %v1762_v49 = vld [vmem:[#allocation2 + $0x20] sm:$0xff]  ;;  %v1767_v54 = vld [vmem:[#allocation2 + $0x48] sm:$0xff]  ;;  %v1817_v0 = vld [vmem:[#allocation2 + $0x1d8] sm:$0xff]  ;;  %v1854_v36 = vsub.s32 3, %v3526_v38 }
 0x8f2   :  { %1917 = vmatpush1.bf16.msra.mxu1 %v1785_v59  ;;  %1877 = vmatprep.subr.bf16.mxu0 %v1789_v3  ;;  %v1777_v17 = vld [vmem:[#allocation2 + $0x98] sm:$0xff]  ;;  %v1822_v4 = vld [vmem:[#allocation2 + $0x200] sm:$0xff]  ;;  %v1827_v11 = vld [vmem:[#allocation2 + $0x228] sm:$0xff] }
 0x8f3   :  { %1918 = vmatprep.subr.bf16.mxu1 %v1791_v12  ;;  %v1782_v9 = vld [vmem:[#allocation2 + $0xc0] sm:$0xff]  ;;  %v1787_v15 = vld [vmem:[#allocation2 + $0xe8] sm:$0xff]  ;;  %v1832_v20 = vld [vmem:[#allocation2 + $0x250] sm:$0xff] }
 0x8f4   :  { %v1837_v22 = vld [vmem:[#allocation2 + $0x278] sm:$0xff]  ;;  %v1838_v31 = vld [vmem:[%s3876_s7] sm:$0x1f] }
 0x8f5   :  { %1878 = vmatpush1.bf16.msra.mxu0 %v1788_v40  ;;  %v1797_v27 = vld [vmem:[#allocation2 + $0x138] sm:$0xff]  ;;  %v1843_v59 = vrot.slane %v1838_v31, %v3542_v55  ;;  %v1851_v3 = vrot.slane %v1838_v31, %v3529_v39  ;;  %v1847_v12 = vrot.slane %v1838_v31, %v3545_v58  ;;  %v1855_v40 = vrot.slane %v1838_v31, %v1854_v36 }
 0x8f6   :  { %1919 = vmatpush1.bf16.msra.mxu1 %v1790_v63  ;;  %1879 = vmatprep.subr.bf16.mxu0 %v1794_v48 }
 0x8f7   :  { %1920 = vmatprep.subr.bf16.mxu1 %v1796_v50 }
 0x8f9   :  { %1880 = vmatpush1.bf16.msra.mxu0 %v1793_v56 }
 0x8fa   :  { %1921 = vmatpush1.bf16.msra.mxu1 %v1795_v53  ;;  %1881 = vmatprep.subr.bf16.mxu0 %v1799_v2 }
 0x8fb   :  { %1922 = vmatprep.subr.bf16.mxu1 %v1801_v60 }
 0x8fd   :  { %1882 = vmatpush1.bf16.msra.mxu0 %v1798_v45 }
 0x8fe   :  { %1923 = vmatpush1.bf16.msra.mxu1 %v1800_v7  ;;  %1883 = vmatprep.subr.bf16.mxu0 %v1804_v61 }
 0x8ff   :  { %1924 = vmatprep.subr.bf16.mxu1 %v1806_v28 }
 0x901   :  { %1884 = vmatpush1.bf16.msra.mxu0 %v1803_v42 }
 0x902   :  { %1925 = vmatpush1.bf16.msra.mxu1 %v1805_v47  ;;  %1885 = vmatprep.subr.bf16.mxu0 %v1809_v5 }
 0x903   :  { %1926 = vmatprep.subr.bf16.mxu1 %v1811_v10 }
 0x905   :  { %1886 = vmatpush1.bf16.msra.mxu0 %v1808_v13 }
 0x906   :  { %1927 = vmatpush1.bf16.msra.mxu1 %v1810_v14  ;;  %1887 = vmatprep.subr.bf16.mxu0 %v1814_v18 }
 0x907   :  { %1928 = vmatprep.subr.bf16.mxu1 %v1816_v19 }
 0x909   :  { %1888 = vmatpush1.bf16.msra.mxu0 %v1813_v21 }
 0x90a   :  { %1929 = vmatpush1.bf16.msra.mxu1 %v1815_v33  ;;  %1889 = vmatprep.subr.bf16.mxu0 %v1819_v25 }
 0x90b   :  { %1930 = vmatprep.subr.bf16.mxu1 %v1821_v26 }
 0x90d   :  { %1890 = vmatpush1.bf16.msra.mxu0 %v1818_v6 }
 0x90e   :  { %1931 = vmatpush1.bf16.msra.mxu1 %v1820_v29  ;;  %1891 = vmatprep.subr.bf16.mxu0 %v1824_v30  ;;  %v2017_v29 = vld [vmem:[%s3877_s8] sm:$0x1f] }
 0x90f   :  { %1932 = vmatprep.subr.bf16.mxu1 %v1826_v35  ;;  %v2022_v30 = vrot.slane %v2017_v29, %v3542_v55  ;;  %v2026_v35 = vrot.slane %v2017_v29, %v3545_v58 }
 0x911   :  { %1892 = vmatpush1.bf16.msra.mxu0 %v1823_v37  ;;  %v2030_v37 = vrot.slane %v2017_v29, %v3529_v39 }
 0x912   :  { %1933 = vmatpush1.bf16.msra.mxu1 %v1825_v1  ;;  %1893 = vmatprep.subr.bf16.mxu0 %v1829_v51  ;;  %v1858_v51 = vsub.s32 4, %v3526_v38 }
 0x913   :  { %1934 = vmatprep.subr.bf16.mxu1 %v1831_v16  ;;  %v2034_v16 = vrot.slane %v2017_v29, %v1854_v36 }
 0x915   :  { %1894 = vmatpush1.bf16.msra.mxu0 %v1828_v24 }
 0x916   :  { %1935 = vmatpush1.bf16.msra.mxu1 %v1830_v32  ;;  %1895 = vmatprep.subr.bf16.mxu0 %v1834_v44 }
 0x917   :  { %1936 = vmatprep.subr.bf16.mxu1 %v1836_v8 }
 0x919   :  { %1896 = vmatpush1.bf16.msra.mxu0 %v1833_v34 }
 0x91a   :  { %1937 = vmatpush1.bf16.msra.mxu1 %v1835_v41  ;;  %2271 = vmatprep.subr.bf16.mxu0 %v1802_v43 }
 0x91c   :  { %1898 = vmatmul.mubr.bf16.vlgmr.msra.gmra.mrb[16].mxu0 %v1756_v46 }
 0x91d   :  { %1939 = vmatmul.mubr.bf16.vlgmr.msra.gmra.mrb[24].mxu1 %v1756_v46  ;;  %2272 = vmatpush3.bf16.msra.mxu0 %v1762_v49 }
 0x91e   :  { %1979 = vmatprep.mubr.bf16.mxu0 %v3845_v23  ;;  %2273 = vmatprep.subr.bf16.mxu0 %v1807_v52  ;;  %v1792_v23 = vld [vmem:[#allocation2 + $0x110] sm:$0xff] }
 0x921   :  { %2274 = vmatpush3.bf16.msra.mxu0 %v1767_v54 }
 0x922   :  { %2275 = vmatprep.subr.bf16.mxu0 %v1812_v57 }
 0x925   :  { %2276 = vmatpush3.bf16.msra.mxu0 %v1772_v62 }
 0x926   :  { %2277 = vmatprep.subr.bf16.mxu0 %v1817_v0 }
 0x929   :  { %2278 = vmatpush3.bf16.msra.mxu0 %v1777_v17 }
 0x92a   :  { %2279 = vmatprep.subr.bf16.mxu0 %v1822_v4 }
 0x92d   :  { %2280 = vmatpush3.bf16.msra.mxu0 %v1782_v9  ;;  %v2038_v9 = vrot.slane %v2017_v29, %v1858_v51 }
 0x92e   :  { %2281 = vmatprep.subr.bf16.mxu0 %v1827_v11 }
 0x931   :  { %2282 = vmatpush3.bf16.msra.mxu0 %v1787_v15 }
 0x932   :  { %2283 = vmatprep.subr.bf16.mxu0 %v1832_v20 }
 0x935   :  { %2284 = vmatpush3.bf16.msra.mxu0 %v1792_v23  ;;  %v2122_v23 = vld [vmem:[#allocation4] ss:$0 sm:$0xff] }
 0x936   :  { %2285 = vmatprep.subr.bf16.mxu0 %v1837_v22 }
 0x939   :  { %2286 = vmatpush3.bf16.msra.mxu0 %v1797_v27 }
 0x93c   :  { %1980 = vmatmul.mubr.bf16.vlgmr.msra.gmra.mrb[20].mxu0 %v1756_v46  ;;  %v1859_v46 = vrot.slane %v1838_v31, %v1858_v51 }
 0x9ef   :  { %v1899_v63 = vpop.f32.mrb[16].mxu0 }
 0x9f0   :  { %v1940_v48 = vpop.f32.mrb[24].mxu1  ;;  %v1900_v50 = vadd.f32 %v1899_v63, %v1843_v59  ;;  %v1901_v56 = vpop.f32.mrb[17].mxu0 }
 0x9f1   :  { %v1941_v53 = vadd.f32 %v1940_v48, %v1851_v3  ;;  %v1942_v2 = vpop.f32.mrb[25].mxu1  ;;  %v1902_v60 = vadd.f32 %v1901_v56, %v1847_v12  ;;  %v1903_v45 = vpop.f32.mrb[18].mxu0 }
 0x9f2   :  { %v1943_v7 = vadd.f32 %v1942_v2, %v1855_v40  ;;  %v1944_v61 = vpop.f32.mrb[26].mxu1  ;;  %v2117_v28 = vmul.f32 -1.442695, %v1900_v50  ;;  %v1904_v42 = vpop.f32.mrb[19].mxu0 }
 0x9f3   :  { %v2119_v47 = vmul.f32 -1.442695, %v1941_v53  ;;  %v1945_v5 = vpop.f32.mrb[27].mxu1  ;;  %v2118_v10 = vmul.f32 -1.442695, %v1902_v60 }
 0x9f4   :  { %v2120_v13 = vmul.f32 -1.442695, %v1943_v7  ;;  %3190 = vpow2.f32 %v2117_v28 }
 0x9f5   :  { %3192 = vpow2.f32 %v2118_v10 }
 0x9f6   :  { %3194 = vpow2.f32 %v2119_v47 }
 0x9f7   :  { %3196 = vpow2.f32 %v2120_v13 }
 0x9fe   :  { %v3191_v14 = vpop.eup %3190 }
 0x9ff   :  { %v3193_v18 = vpop.eup %3192  ;;  %v2002_v19 = vadd.f32 1.0, %v3191_v14 }
 0xa00   :  { %v3195_v21 = vpop.eup %3194  ;;  %v2003_v33 = vadd.f32 1.0, %v3193_v18 }
 0xa01   :  { %v3197_v25 = vpop.eup %3196  ;;  %3198 = vrcp.f32 %v2002_v19  ;;  %v2004_v26 = vadd.f32 1.0, %v3195_v21 }
 0xa02   :  { %3200 = vrcp.f32 %v2003_v33  ;;  %v2005_v6 = vadd.f32 1.0, %v3197_v25 }
 0xa03   :  { %3202 = vrcp.f32 %v2004_v26 }
 0xa04   :  { %3204 = vrcp.f32 %v2005_v6 }
 0xa0b   :  { %v3199_v1 = vpop.eup %3198 }
 0xa0c   :  { %v3201_v24 = vpop.eup %3200  ;;  %v2044_v32 = vmul.f32 %v3199_v1, %v2022_v30 }
 0xa0d   :  { %v3203_v44 = vpop.eup %3202  ;;  %v2045_v8 = vmul.f32 %v3201_v24, %v2026_v35 }
 0xa0e   :  { %v3205_v34 = vpop.eup %3204  ;;  %v2046_v41 = vmul.f32 %v3203_v44, %v2030_v37 }
 0xa0f   :  { %v2287_v43 = vpop.f32.mrb[20].mxu0  ;;  %v2047_v49 = vmul.f32 %v3205_v34, %v2034_v16  ;;  %v2049_v52 = vadd.f32 %v2045_v8, %v2044_v32 }
 0xa10   :  { %v2288_v54 = vpop.f32.mrb[21].mxu0 }
 0xa11   :  { %v2289_v55 = vadd.f32 %v2288_v54, %v2287_v43  ;;  %v2290_v57 = vpop.f32.mrb[22].mxu0  ;;  %v2050_v58 = vadd.f32 %v2049_v52, %v2046_v41 }
 0xa12   :  { %v2291_v62 = vpop.f32.mrb[23].mxu0 }
 0xa13   :  { %v1982_v39 = vadd.f32 %v2289_v55, %v1859_v46  ;;  %v2051_v0 = vadd.f32 %v2050_v58, %v2047_v49 }
 0xa15   :  { %v2121_v17 = vmul.f32 -1.442695, %v1982_v39 }
 0xa17   :  { %3206 = vpow2.f32 %v2121_v17 }
 0xa21   :  { %v3207_v38 = vpop.eup %3206 }
 0xa22   :  { %v2006_v4 = vadd.f32 1.0, %v3207_v38 }
 0xa24   :  { %3208 = vrcp.f32 %v2006_v4 }
 0xa2e   :  { %v3209_v11 = vpop.eup %3208 }
 0xa2f   :  { %v2048_v15 = vmul.f32 %v3209_v11, %v2038_v9 }
 0xa31   :  { %v2052_v20 = vadd.f32 %v2051_v0, %v2048_v15 }
 0xa33   :  { %2053 = vadd.xlane.f32.xlu0 %v2052_v20 }
 0xac0   :  { %v2054_v22 = vpop.xlane.xlu0 %2053 }
 0xac1   :  { %v2062_v27 = vadd.f32 %v2122_v23, %v2054_v22 }
 0xac3   :  { %v2123_v31 = vmul.f32 -1.442695, %v2062_v27 }
 0xac5   :  { %3210 = vpow2.f32 %v2123_v31 }
 0xacf   :  { %v3211_v36 = vpop.eup %3210 }
 0xad0   :  { %v2066_v59 = vadd.f32 1.0, %v3211_v36 }
 0xad2   :  { %3212 = vrcp.f32 %v2066_v59 }
 0xadc   :  { %v3213_v3 = vpop.eup %3212 }
 0xadd   :  { %2070 = vst.msk [vmem:[%s3879_s10] sm:$0xff] %vm2069_vm5, %v3213_v3 }
 0xade   :  { %2075 = vsyncpa [#allocation6], 1 }
 0xadf   :  { %2076 = vsyncmov [#allocation3] }
 0xae2   :  { %s2077_s14 = vpop.sfrf %2076 }
 0xae3   :  { %p2124_p8 = scmp.ne.s32.totalorder %s2077_s14, 0 }
 0xae5   :  { %2081 = shalt.err (%p2124_p8)  }

</bundles_post_ra>
